<compile_context>
chip_gen: v7x
topology: tpu7x:2x2x1
jax: 0.10.0
libtpu: 0.0.40
codegen_flags: <defaults>
</compile_context>

<pallas_src>
import jax
import jax.numpy as jnp
from jax import lax
from jax.experimental import pallas as pl
from jax.experimental.pallas import tpu as pltpu


def _bilstm_linear_kernel(x_ref, wih_ref, whh_f_ref, whh_b_ref, b_ref,
                          wlin_f_ref, wlin_b_ref, blin_ref,
                          out_ref, xg_ref, hf_ref, hb_ref):
    """Fused BiLSTM recurrence + output linear layer, all in VMEM.

    x_ref      : (T, B, E)   time-major embedded input
    wih_ref    : (E, 8H)     input->gates weights, cols [fwd i,f,o,g | bwd i,f,o,g]
    whh_*_ref  : (H, 4H)     hidden->gates weights, gate order [i, f, o, g]
    b_ref      : (1, 8H)     b_ih + b_hh combined, [fwd 4H | bwd 4H]
    wlin_f_ref : (H, L)      top-H rows of linear weight (forward half)
    wlin_b_ref : (H, L)      bottom-H rows of linear weight (backward half)
    blin_ref   : (1, L)
    out_ref    : (T, B, L)   emissions
    xg_ref     : (T, B, 8H)  scratch: precomputed input projections (both dirs)
    hf_ref     : (T, B, H)   scratch: forward hidden states
    hb_ref     : (T, B, H)   scratch: backward hidden states
    """
    T, B, E = x_ref.shape
    H = whh_f_ref.shape[0]
    G = 4 * H

    # --- 1. Hoisted input projections + bias: ONE big, well-shaped MXU matmul
    #        covering both directions, completely off the recurrent chain.
    x2d = x_ref[...].reshape(T * B, E)
    xg_ref[...] = (jnp.dot(x2d, wih_ref[...],
                           preferred_element_type=jnp.float32)
                   + b_ref[...]).reshape(T, B, 2 * G)

    # --- 2. Loop-invariant weights read once (not per iteration).
    whh_f = whh_f_ref[...]
    whh_b = whh_b_ref[...]

    h0 = jnp.zeros((B, H), jnp.float32)
    c0 = jnp.zeros((B, H), jnp.float32)

    # --- 3. Fused fwd + bwd recurrence (fwd at t, bwd at T-1-t). Only
    #        h @ W_hh remains on each serial dependency chain; the two
    #        directions are independent chains the scheduler can interleave.
    #        Gate layout [i, f, o, g]: sigmoid over one contiguous 3H slab,
    #        tanh over the last H lanes. Reads from xg_ref are aligned full
    #        lane tiles (fwd = lanes [0,4H), bwd = lanes [4H,8H)).
    def step(t, carry):
        hf, cf, hb, cb = carry
        tb = T - 1 - t

        gf = xg_ref[t, :, :G] + jnp.dot(hf, whh_f,
                                        preferred_element_type=jnp.float32)
        gb = xg_ref[tb, :, G:] + jnp.dot(hb, whh_b,
                                         preferred_element_type=jnp.float32)

        sf = jax.nn.sigmoid(gf[:, :3 * H])      # [i | f | o]  forward
        gf_t = jnp.tanh(gf[:, 3 * H:])          # [g]          forward
        sb = jax.nn.sigmoid(gb[:, :3 * H])      # [i | f | o]  backward
        gb_t = jnp.tanh(gb[:, 3 * H:])          # [g]          backward

        cf = sf[:, H:2 * H] * cf + sf[:, :H] * gf_t
        hf = sf[:, 2 * H:] * jnp.tanh(cf)
        cb = sb[:, H:2 * H] * cb + sb[:, :H] * gb_t
        hb = sb[:, 2 * H:] * jnp.tanh(cb)

        hf_ref[t] = hf
        hb_ref[tb] = hb
        return hf, cf, hb, cb

    lax.fori_loop(0, T, step, (h0, c0, h0, c0), unroll=True)

    # --- 4. Output projection, split-weight form (no concat, no (T,B,2H)
    #        temporary): two big (T*B, H) x (H, L) matmuls + bias.
    emis = (jnp.dot(hf_ref[...].reshape(T * B, H), wlin_f_ref[...],
                    preferred_element_type=jnp.float32)
            + jnp.dot(hb_ref[...].reshape(T * B, H), wlin_b_ref[...],
                      preferred_element_type=jnp.float32)
            + blin_ref[...])
    out_ref[...] = emis.reshape(T, B, -1)


def lstm_glove_vecs_forward(token_ids, p):
    """token_ids: (B, T) int32, p: kernel-layout params (see pack_params).

    Returns emissions (B, T, num_labels) float32.
    """
    glove = p["glove"]
    # Fold the (B,T)->(T,B) transpose into the embedding gather: no extra
    # HBM pass over the activation tensor.
    x_tm = jnp.take(glove, token_ids.T, axis=0).astype(jnp.float32)  # (T, B, E)
    T, B, E = x_tm.shape
    H = p["whh_f"].shape[0]
    L = p["wlin_f"].shape[1]

    kernel = pl.pallas_call(
        _bilstm_linear_kernel,
        out_shape=jax.ShapeDtypeStruct((T, B, L), jnp.float32),
        in_specs=[pl.BlockSpec(memory_space=pltpu.MemorySpace.VMEM)] * 8,
        out_specs=pl.BlockSpec(memory_space=pltpu.MemorySpace.VMEM),
        scratch_shapes=[
            pltpu.VMEM((T, B, 8 * H), jnp.float32),   # xg: fused input proj
            pltpu.VMEM((T, B, H), jnp.float32),       # hf
            pltpu.VMEM((T, B, H), jnp.float32),       # hb
        ],
    )
    out_tm = kernel(x_tm,
                    p["wih"], p["whh_f"], p["whh_b"], p["b"],
                    p["wlin_f"], p["wlin_b"], p["b_lin"])
    # back to PyTorch batch_first layout (could be left time-major and fused
    # into a downstream consumer instead).
    return jnp.transpose(out_tm, (1, 0, 2))           # (B, T, L)


def pack_params(params):
    """PyTorch nn.LSTM / nn.Linear layout -> kernel layout.

    PyTorch gate order along the 4H axis is [i, f, g, o]; the kernel uses
    [i, f, o, g] so sigmoid covers one contiguous 3H slab and tanh the last H.
    The forward/backward input-projection weights and biases are additionally
    concatenated along the output axis ([fwd 4H | bwd 4H]) so the kernel can
    do one fused (T*B, E) x (E, 8H) matmul.
    """
    H = params["weight_hh_l0"].shape[1]

    def regate(w):  # w: (4H, X), PyTorch [i,f,g,o] rows -> [i,f,o,g]
        i, f, g, o = jnp.split(w, 4, axis=0)
        return jnp.concatenate([i, f, o, g], axis=0)

    def pack_dir(sfx):
        wih = regate(params["weight_ih_l0" + sfx]).T                    # (E, 4H)
        whh = regate(params["weight_hh_l0" + sfx]).T                    # (H, 4H)
        b = regate((params["bias_ih_l0" + sfx]
                    + params["bias_hh_l0" + sfx])[:, None]).T           # (1, 4H)
        return wih, whh, b

    wih_f, whh_f, b_f = pack_dir("")
    wih_b, whh_b, b_b = pack_dir("_reverse")
    w_lin = params["linear_weight"].T                                   # (2H, L)
    return {
        "glove": params["glove"],
        "wih": jnp.concatenate([wih_f, wih_b], axis=1),                 # (E, 8H)
        "whh_f": whh_f, "whh_b": whh_b,
        "b": jnp.concatenate([b_f, b_b], axis=1),                       # (1, 8H)
        "wlin_f": w_lin[:H], "wlin_b": w_lin[H:],                       # (H, L) each
        "b_lin": params["linear_bias"][None, :],                        # (1, L)
    }


def init_params(key, vocab_size, embedding_dim, hidden_dim, num_labels):
    """Deterministic synthetic parameters in native PyTorch shapes."""
    ks = jax.random.split(key, 11)
    E, H, L = embedding_dim, hidden_dim, num_labels
    s = 0.1
    glove = jax.random.normal(ks[0], (vocab_size, E), jnp.float32)
    glove = glove.at[0].set(0.0)  # padding row (only affects grads in PyTorch)
    return {
        "glove": glove,
        "weight_ih_l0": s * jax.random.normal(ks[1], (4 * H, E), jnp.float32),
        "weight_hh_l0": s * jax.random.normal(ks[2], (4 * H, H), jnp.float32),
        "bias_ih_l0":   s * jax.random.normal(ks[3], (4 * H,), jnp.float32),
        "bias_hh_l0":   s * jax.random.normal(ks[4], (4 * H,), jnp.float32),
        "weight_ih_l0_reverse": s * jax.random.normal(ks[5], (4 * H, E), jnp.float32),
        "weight_hh_l0_reverse": s * jax.random.normal(ks[6], (4 * H, H), jnp.float32),
        "bias_ih_l0_reverse":   s * jax.random.normal(ks[7], (4 * H,), jnp.float32),
        "bias_hh_l0_reverse":   s * jax.random.normal(ks[8], (4 * H,), jnp.float32),
        "linear_weight": s * jax.random.normal(ks[9], (L, 2 * H), jnp.float32),
        "linear_bias":   s * jax.random.normal(ks[10], (L,), jnp.float32),
    }


def _reference_forward(token_ids, p):
    """Pure-JAX reference matching PyTorch bidirectional nn.LSTM inference."""
    x = jnp.take(p["glove"], token_ids, axis=0).astype(jnp.float32)   # (B, T, E)
    H = p["weight_hh_l0"].shape[1]
    xs = jnp.transpose(x, (1, 0, 2))                                  # (T, B, E)
    B = xs.shape[1]

    def run_dir(seq, sfx):
        wih = p["weight_ih_l0" + sfx]
        whh = p["weight_hh_l0" + sfx]
        b = p["bias_ih_l0" + sfx] + p["bias_hh_l0" + sfx]

        def step(carry, x_t):
            h, c = carry
            gates = x_t @ wih.T + h @ whh.T + b
            i, f, g, o = jnp.split(gates, 4, axis=-1)
            i, f, o = jax.nn.sigmoid(i), jax.nn.sigmoid(f), jax.nn.sigmoid(o)
            g = jnp.tanh(g)
            c = f * c + i * g
            h = o * jnp.tanh(c)
            return (h, c), h

        h0 = jnp.zeros((B, H), jnp.float32)
        c0 = jnp.zeros((B, H), jnp.float32)
        _, hs = lax.scan(step, (h0, c0), seq)
        return hs

    hf = run_dir(xs, "")
    hb = run_dir(xs[::-1], "_reverse")[::-1]
    lstm_out = jnp.concatenate([hf, hb], axis=-1)                     # (T, B, 2H)
    emis = lstm_out @ p["linear_weight"].T + p["linear_bias"]
    return jnp.transpose(emis, (1, 0, 2))                             # (B, T, L)


if __name__ == "__main__":
    # small, module-consistent shapes
    VOCAB, E, H, L = 20, 16, 32, 5
    B, T = 2, 8

    key = jax.random.PRNGKey(0)
    k_par, k_tok = jax.random.split(key)
    torch_params = init_params(k_par, VOCAB, E, H, L)
    packed = pack_params(torch_params)
    token_ids = jax.random.randint(k_tok, (B, T), 0, VOCAB, dtype=jnp.int32)

    emissions = jax.block_until_ready(lstm_glove_vecs_forward(token_ids, packed))

    assert emissions.shape == (B, T, L), emissions.shape
    assert bool(jnp.all(jnp.isfinite(emissions)))

    # correctness check against a pure-JAX PyTorch-semantics reference
    ref = jax.block_until_ready(_reference_forward(token_ids, torch_params))
    max_err = float(jnp.max(jnp.abs(emissions - ref)))
    assert max_err < 1e-4, max_err

    print("KERNEL_OK")
</pallas_src>

<mosaic_0001>
module attributes {stable_mosaic.version = 11 : i64} {
  func.func @_bilstm_linear_kernel(%arg0: memref<8x2x16xf32, #tpu.memory_space<vmem>>, %arg1: memref<16x256xf32, #tpu.memory_space<vmem>>, %arg2: memref<32x128xf32, #tpu.memory_space<vmem>>, %arg3: memref<32x128xf32, #tpu.memory_space<vmem>>, %arg4: memref<1x256xf32, #tpu.memory_space<vmem>>, %arg5: memref<32x5xf32, #tpu.memory_space<vmem>>, %arg6: memref<32x5xf32, #tpu.memory_space<vmem>>, %arg7: memref<1x5xf32, #tpu.memory_space<vmem>>, %arg8: memref<8x2x5xf32, #tpu.memory_space<vmem>>, %arg9: memref<8x2x256xf32, #tpu.memory_space<vmem>>, %arg10: memref<8x2x32xf32, #tpu.memory_space<vmem>>, %arg11: memref<8x2x32xf32, #tpu.memory_space<vmem>>) attributes {dimension_semantics = [], scalar_prefetch = 0 : i64, scratch_operands = 3 : i64, tpu.core_type = #tpu.core_type<tc>} {
    %c0 = arith.constant 0 : index
    %c0_0 = arith.constant 0 : index
    %c0_1 = arith.constant 0 : index
    %0 = vector.load %arg0[%c0, %c0_0, %c0_1] : memref<8x2x16xf32, #tpu.memory_space<vmem>>, vector<8x2x16xf32>
    %1 = vector.shape_cast %0 : vector<8x2x16xf32> to vector<16x16xf32>
    %c0_2 = arith.constant 0 : index
    %c0_3 = arith.constant 0 : index
    %2 = vector.load %arg1[%c0_2, %c0_3] : memref<16x256xf32, #tpu.memory_space<vmem>>, vector<16x256xf32>
    %cst = arith.constant dense<0.000000e+00> : vector<16x256xf32>
    %3 = tpu.matmul %1, %2, %cst {dimension_numbers = #tpu.dot_dimension_numbers<[1], [0], [0], [1], [0, 0, 1, 1], [], []>} : vector<16x16xf32>, vector<16x256xf32>, vector<16x256xf32> -> vector<16x256xf32>
    %c0_4 = arith.constant 0 : index
    %c0_5 = arith.constant 0 : index
    %4 = vector.load %arg4[%c0_4, %c0_5] : memref<1x256xf32, #tpu.memory_space<vmem>>, vector<1x256xf32>
    %5 = vector.broadcast %4 : vector<1x256xf32> to vector<16x256xf32>
    %6 = arith.addf %3, %5 : vector<16x256xf32>
    %7 = vector.shape_cast %6 : vector<16x256xf32> to vector<8x2x256xf32>
    %c0_6 = arith.constant 0 : index
    %c0_7 = arith.constant 0 : index
    %c0_8 = arith.constant 0 : index
    %8 = vector.load %arg9[%c0_6, %c0_7, %c0_8] : memref<8x2x256xf32, #tpu.memory_space<vmem>>, vector<8x2x256xf32>
    tpu.vector_store %arg9[%c0_6, %c0_7, %c0_8], %7 {strides = array<i32>} : memref<8x2x256xf32, #tpu.memory_space<vmem>>, vector<8x2x256xf32>,
    %c0_9 = arith.constant 0 : index
    %c0_10 = arith.constant 0 : index
    %9 = vector.load %arg2[%c0_9, %c0_10] : memref<32x128xf32, #tpu.memory_space<vmem>>, vector<32x128xf32>
    %c0_11 = arith.constant 0 : index
    %c0_12 = arith.constant 0 : index
    %10 = vector.load %arg3[%c0_11, %c0_12] : memref<32x128xf32, #tpu.memory_space<vmem>>, vector<32x128xf32>
    %cst_13 = arith.constant 0.000000e+00 : f32
    %11 = vector.broadcast %cst_13 : f32 to vector<2x32xf32>
    %cst_14 = arith.constant 0.000000e+00 : f32
    %12 = vector.broadcast %cst_14 : f32 to vector<2x32xf32>
    %c0_i32 = arith.constant 0 : i32
    %c7_i32 = arith.constant 7 : i32
    %13 = arith.subi %c7_i32, %c0_i32 : i32
    %14 = arith.index_cast %c0_i32 : i32 to index
    %c0_15 = arith.constant 0 : index
    %c0_16 = arith.constant 0 : index
    %15 = vector.load %arg9[%14, %c0_15, %c0_16] : memref<8x2x256xf32, #tpu.memory_space<vmem>>, vector<1x2x128xf32>
    %16 = vector.shape_cast %15 : vector<1x2x128xf32> to vector<2x128xf32>
    %cst_17 = arith.constant dense<0.000000e+00> : vector<2x128xf32>
    %17 = tpu.matmul %11, %9, %cst_17 {dimension_numbers = #tpu.dot_dimension_numbers<[1], [0], [0], [1], [0, 0, 1, 1], [], []>} : vector<2x32xf32>, vector<32x128xf32>, vector<2x128xf32> -> vector<2x128xf32>
    %18 = arith.addf %16, %17 : vector<2x128xf32>
    %19 = arith.index_cast %13 : i32 to index
    %c0_18 = arith.constant 0 : index
    %c128 = arith.constant 128 : index
    %20 = vector.load %arg9[%19, %c0_18, %c128] : memref<8x2x256xf32, #tpu.memory_space<vmem>>, vector<1x2x128xf32>
    %21 = vector.shape_cast %20 : vector<1x2x128xf32> to vector<2x128xf32>
    %cst_19 = arith.constant dense<0.000000e+00> : vector<2x128xf32>
    %22 = tpu.matmul %11, %10, %cst_19 {dimension_numbers = #tpu.dot_dimension_numbers<[1], [0], [0], [1], [0, 0, 1, 1], [], []>} : vector<2x32xf32>, vector<32x128xf32>, vector<2x128xf32> -> vector<2x128xf32>
    %23 = arith.addf %21, %22 : vector<2x128xf32>
    %24 = vector.extract_strided_slice %18 {offsets = [0, 0], sizes = [2, 96], strides = [1, 1]} : vector<2x128xf32> to vector<2x96xf32>
    %25 = arith.negf %24 : vector<2x96xf32>
    %26 = math.exp %25 : vector<2x96xf32>
    %cst_20 = arith.constant 1.000000e+00 : f32
    %27 = vector.broadcast %cst_20 : f32 to vector<2x96xf32>
    %28 = arith.addf %27, %26 : vector<2x96xf32>
    %29 = arith.divf %27, %28 : vector<2x96xf32>
    %30 = vector.extract_strided_slice %18 {offsets = [0, 96], sizes = [2, 32], strides = [1, 1]} : vector<2x128xf32> to vector<2x32xf32>
    %31 = math.tanh %30 : vector<2x32xf32>
    %32 = vector.extract_strided_slice %23 {offsets = [0, 0], sizes = [2, 96], strides = [1, 1]} : vector<2x128xf32> to vector<2x96xf32>
    %33 = arith.negf %32 : vector<2x96xf32>
    %34 = math.exp %33 : vector<2x96xf32>
    %cst_21 = arith.constant 1.000000e+00 : f32
    %35 = vector.broadcast %cst_21 : f32 to vector<2x96xf32>
    %36 = arith.addf %35, %34 : vector<2x96xf32>
    %37 = arith.divf %35, %36 : vector<2x96xf32>
    %38 = vector.extract_strided_slice %23 {offsets = [0, 96], sizes = [2, 32], strides = [1, 1]} : vector<2x128xf32> to vector<2x32xf32>
    %39 = math.tanh %38 : vector<2x32xf32>
    %40 = vector.extract_strided_slice %29 {offsets = [0, 32], sizes = [2, 32], strides = [1, 1]} : vector<2x96xf32> to vector<2x32xf32>
    %41 = arith.mulf %40, %12 : vector<2x32xf32>
    %42 = vector.extract_strided_slice %29 {offsets = [0, 0], sizes = [2, 32], strides = [1, 1]} : vector<2x96xf32> to vector<2x32xf32>
    %43 = arith.mulf %42, %31 : vector<2x32xf32>
    %44 = arith.addf %41, %43 : vector<2x32xf32>
    %45 = vector.extract_strided_slice %29 {offsets = [0, 64], sizes = [2, 32], strides = [1, 1]} : vector<2x96xf32> to vector<2x32xf32>
    %46 = math.tanh %44 : vector<2x32xf32>
    %47 = arith.mulf %45, %46 : vector<2x32xf32>
    %48 = vector.extract_strided_slice %37 {offsets = [0, 32], sizes = [2, 32], strides = [1, 1]} : vector<2x96xf32> to vector<2x32xf32>
    %49 = arith.mulf %48, %12 : vector<2x32xf32>
    %50 = vector.extract_strided_slice %37 {offsets = [0, 0], sizes = [2, 32], strides = [1, 1]} : vector<2x96xf32> to vector<2x32xf32>
    %51 = arith.mulf %50, %39 : vector<2x32xf32>
    %52 = arith.addf %49, %51 : vector<2x32xf32>
    %53 = vector.extract_strided_slice %37 {offsets = [0, 64], sizes = [2, 32], strides = [1, 1]} : vector<2x96xf32> to vector<2x32xf32>
    %54 = math.tanh %52 : vector<2x32xf32>
    %55 = arith.mulf %53, %54 : vector<2x32xf32>
    %56 = arith.index_cast %c0_i32 : i32 to index
    %c0_22 = arith.constant 0 : index
    %c0_23 = arith.constant 0 : index
    %57 = vector.load %arg10[%56, %c0_22, %c0_23] : memref<8x2x32xf32, #tpu.memory_space<vmem>>, vector<1x2x32xf32>
    %58 = vector.shape_cast %57 : vector<1x2x32xf32> to vector<2x32xf32>
    %59 = vector.shape_cast %47 : vector<2x32xf32> to vector<1x2x32xf32>
    tpu.vector_store %arg10[%56, %c0_22, %c0_23], %59 {strides = array<i32>} : memref<8x2x32xf32, #tpu.memory_space<vmem>>, vector<1x2x32xf32>,
    %60 = arith.index_cast %13 : i32 to index
    %c0_24 = arith.constant 0 : index
    %c0_25 = arith.constant 0 : index
    %61 = vector.load %arg11[%60, %c0_24, %c0_25] : memref<8x2x32xf32, #tpu.memory_space<vmem>>, vector<1x2x32xf32>
    %62 = vector.shape_cast %61 : vector<1x2x32xf32> to vector<2x32xf32>
    %63 = vector.shape_cast %55 : vector<2x32xf32> to vector<1x2x32xf32>
    tpu.vector_store %arg11[%60, %c0_24, %c0_25], %63 {strides = array<i32>} : memref<8x2x32xf32, #tpu.memory_space<vmem>>, vector<1x2x32xf32>,
    %c1_i32 = arith.constant 1 : i32
    %c7_i32_26 = arith.constant 7 : i32
    %64 = arith.subi %c7_i32_26, %c1_i32 : i32
    %65 = arith.index_cast %c1_i32 : i32 to index
    %c0_27 = arith.constant 0 : index
    %c0_28 = arith.constant 0 : index
    %66 = vector.load %arg9[%65, %c0_27, %c0_28] : memref<8x2x256xf32, #tpu.memory_space<vmem>>, vector<1x2x128xf32>
    %67 = vector.shape_cast %66 : vector<1x2x128xf32> to vector<2x128xf32>
    %cst_29 = arith.constant dense<0.000000e+00> : vector<2x128xf32>
    %68 = tpu.matmul %47, %9, %cst_29 {dimension_numbers = #tpu.dot_dimension_numbers<[1], [0], [0], [1], [0, 0, 1, 1], [], []>} : vector<2x32xf32>, vector<32x128xf32>, vector<2x128xf32> -> vector<2x128xf32>
    %69 = arith.addf %67, %68 : vector<2x128xf32>
    %70 = arith.index_cast %64 : i32 to index
    %c0_30 = arith.constant 0 : index
    %c128_31 = arith.constant 128 : index
    %71 = vector.load %arg9[%70, %c0_30, %c128_31] : memref<8x2x256xf32, #tpu.memory_space<vmem>>, vector<1x2x128xf32>
    %72 = vector.shape_cast %71 : vector<1x2x128xf32> to vector<2x128xf32>
    %cst_32 = arith.constant dense<0.000000e+00> : vector<2x128xf32>
    %73 = tpu.matmul %55, %10, %cst_32 {dimension_numbers = #tpu.dot_dimension_numbers<[1], [0], [0], [1], [0, 0, 1, 1], [], []>} : vector<2x32xf32>, vector<32x128xf32>, vector<2x128xf32> -> vector<2x128xf32>
    %74 = arith.addf %72, %73 : vector<2x128xf32>
    %75 = vector.extract_strided_slice %69 {offsets = [0, 0], sizes = [2, 96], strides = [1, 1]} : vector<2x128xf32> to vector<2x96xf32>
    %76 = arith.negf %75 : vector<2x96xf32>
    %77 = math.exp %76 : vector<2x96xf32>
    %cst_33 = arith.constant 1.000000e+00 : f32
    %78 = vector.broadcast %cst_33 : f32 to vector<2x96xf32>
    %79 = arith.addf %78, %77 : vector<2x96xf32>
    %80 = arith.divf %78, %79 : vector<2x96xf32>
    %81 = vector.extract_strided_slice %69 {offsets = [0, 96], sizes = [2, 32], strides = [1, 1]} : vector<2x128xf32> to vector<2x32xf32>
    %82 = math.tanh %81 : vector<2x32xf32>
    %83 = vector.extract_strided_slice %74 {offsets = [0, 0], sizes = [2, 96], strides = [1, 1]} : vector<2x128xf32> to vector<2x96xf32>
    %84 = arith.negf %83 : vector<2x96xf32>
    %85 = math.exp %84 : vector<2x96xf32>
    %cst_34 = arith.constant 1.000000e+00 : f32
    %86 = vector.broadcast %cst_34 : f32 to vector<2x96xf32>
    %87 = arith.addf %86, %85 : vector<2x96xf32>
    %88 = arith.divf %86, %87 : vector<2x96xf32>
    %89 = vector.extract_strided_slice %74 {offsets = [0, 96], sizes = [2, 32], strides = [1, 1]} : vector<2x128xf32> to vector<2x32xf32>
    %90 = math.tanh %89 : vector<2x32xf32>
    %91 = vector.extract_strided_slice %80 {offsets = [0, 32], sizes = [2, 32], strides = [1, 1]} : vector<2x96xf32> to vector<2x32xf32>
    %92 = arith.mulf %91, %44 : vector<2x32xf32>
    %93 = vector.extract_strided_slice %80 {offsets = [0, 0], sizes = [2, 32], strides = [1, 1]} : vector<2x96xf32> to vector<2x32xf32>
    %94 = arith.mulf %93, %82 : vector<2x32xf32>
    %95 = arith.addf %92, %94 : vector<2x32xf32>
    %96 = vector.extract_strided_slice %80 {offsets = [0, 64], sizes = [2, 32], strides = [1, 1]} : vector<2x96xf32> to vector<2x32xf32>
    %97 = math.tanh %95 : vector<2x32xf32>
    %98 = arith.mulf %96, %97 : vector<2x32xf32>
    %99 = vector.extract_strided_slice %88 {offsets = [0, 32], sizes = [2, 32], strides = [1, 1]} : vector<2x96xf32> to vector<2x32xf32>
    %100 = arith.mulf %99, %52 : vector<2x32xf32>
    %101 = vector.extract_strided_slice %88 {offsets = [0, 0], sizes = [2, 32], strides = [1, 1]} : vector<2x96xf32> to vector<2x32xf32>
    %102 = arith.mulf %101, %90 : vector<2x32xf32>
    %103 = arith.addf %100, %102 : vector<2x32xf32>
    %104 = vector.extract_strided_slice %88 {offsets = [0, 64], sizes = [2, 32], strides = [1, 1]} : vector<2x96xf32> to vector<2x32xf32>
    %105 = math.tanh %103 : vector<2x32xf32>
    %106 = arith.mulf %104, %105 : vector<2x32xf32>
    %107 = arith.index_cast %c1_i32 : i32 to index
    %c0_35 = arith.constant 0 : index
    %c0_36 = arith.constant 0 : index
    %108 = vector.load %arg10[%107, %c0_35, %c0_36] : memref<8x2x32xf32, #tpu.memory_space<vmem>>, vector<1x2x32xf32>
    %109 = vector.shape_cast %108 : vector<1x2x32xf32> to vector<2x32xf32>
    %110 = vector.shape_cast %98 : vector<2x32xf32> to vector<1x2x32xf32>
    tpu.vector_store %arg10[%107, %c0_35, %c0_36], %110 {strides = array<i32>} : memref<8x2x32xf32, #tpu.memory_space<vmem>>, vector<1x2x32xf32>,
    %111 = arith.index_cast %64 : i32 to index
    %c0_37 = arith.constant 0 : index
    %c0_38 = arith.constant 0 : index
    %112 = vector.load %arg11[%111, %c0_37, %c0_38] : memref<8x2x32xf32, #tpu.memory_space<vmem>>, vector<1x2x32xf32>
    %113 = vector.shape_cast %112 : vector<1x2x32xf32> to vector<2x32xf32>
    %114 = vector.shape_cast %106 : vector<2x32xf32> to vector<1x2x32xf32>
    tpu.vector_store %arg11[%111, %c0_37, %c0_38], %114 {strides = array<i32>} : memref<8x2x32xf32, #tpu.memory_space<vmem>>, vector<1x2x32xf32>,
    %c2_i32 = arith.constant 2 : i32
    %c7_i32_39 = arith.constant 7 : i32
    %115 = arith.subi %c7_i32_39, %c2_i32 : i32
    %116 = arith.index_cast %c2_i32 : i32 to index
    %c0_40 = arith.constant 0 : index
    %c0_41 = arith.constant 0 : index
    %117 = vector.load %arg9[%116, %c0_40, %c0_41] : memref<8x2x256xf32, #tpu.memory_space<vmem>>, vector<1x2x128xf32>
    %118 = vector.shape_cast %117 : vector<1x2x128xf32> to vector<2x128xf32>
    %cst_42 = arith.constant dense<0.000000e+00> : vector<2x128xf32>
    %119 = tpu.matmul %98, %9, %cst_42 {dimension_numbers = #tpu.dot_dimension_numbers<[1], [0], [0], [1], [0, 0, 1, 1], [], []>} : vector<2x32xf32>, vector<32x128xf32>, vector<2x128xf32> -> vector<2x128xf32>
    %120 = arith.addf %118, %119 : vector<2x128xf32>
    %121 = arith.index_cast %115 : i32 to index
    %c0_43 = arith.constant 0 : index
    %c128_44 = arith.constant 128 : index
    %122 = vector.load %arg9[%121, %c0_43, %c128_44] : memref<8x2x256xf32, #tpu.memory_space<vmem>>, vector<1x2x128xf32>
    %123 = vector.shape_cast %122 : vector<1x2x128xf32> to vector<2x128xf32>
    %cst_45 = arith.constant dense<0.000000e+00> : vector<2x128xf32>
    %124 = tpu.matmul %106, %10, %cst_45 {dimension_numbers = #tpu.dot_dimension_numbers<[1], [0], [0], [1], [0, 0, 1, 1], [], []>} : vector<2x32xf32>, vector<32x128xf32>, vector<2x128xf32> -> vector<2x128xf32>
    %125 = arith.addf %123, %124 : vector<2x128xf32>
    %126 = vector.extract_strided_slice %120 {offsets = [0, 0], sizes = [2, 96], strides = [1, 1]} : vector<2x128xf32> to vector<2x96xf32>
    %127 = arith.negf %126 : vector<2x96xf32>
    %128 = math.exp %127 : vector<2x96xf32>
    %cst_46 = arith.constant 1.000000e+00 : f32
    %129 = vector.broadcast %cst_46 : f32 to vector<2x96xf32>
    %130 = arith.addf %129, %128 : vector<2x96xf32>
    %131 = arith.divf %129, %130 : vector<2x96xf32>
    %132 = vector.extract_strided_slice %120 {offsets = [0, 96], sizes = [2, 32], strides = [1, 1]} : vector<2x128xf32> to vector<2x32xf32>
    %133 = math.tanh %132 : vector<2x32xf32>
    %134 = vector.extract_strided_slice %125 {offsets = [0, 0], sizes = [2, 96], strides = [1, 1]} : vector<2x128xf32> to vector<2x96xf32>
    %135 = arith.negf %134 : vector<2x96xf32>
    %136 = math.exp %135 : vector<2x96xf32>
    %cst_47 = arith.constant 1.000000e+00 : f32
    %137 = vector.broadcast %cst_47 : f32 to vector<2x96xf32>
    %138 = arith.addf %137, %136 : vector<2x96xf32>
    %139 = arith.divf %137, %138 : vector<2x96xf32>
    %140 = vector.extract_strided_slice %125 {offsets = [0, 96], sizes = [2, 32], strides = [1, 1]} : vector<2x128xf32> to vector<2x32xf32>
    %141 = math.tanh %140 : vector<2x32xf32>
    %142 = vector.extract_strided_slice %131 {offsets = [0, 32], sizes = [2, 32], strides = [1, 1]} : vector<2x96xf32> to vector<2x32xf32>
    %143 = arith.mulf %142, %95 : vector<2x32xf32>
    %144 = vector.extract_strided_slice %131 {offsets = [0, 0], sizes = [2, 32], strides = [1, 1]} : vector<2x96xf32> to vector<2x32xf32>
    %145 = arith.mulf %144, %133 : vector<2x32xf32>
    %146 = arith.addf %143, %145 : vector<2x32xf32>
    %147 = vector.extract_strided_slice %131 {offsets = [0, 64], sizes = [2, 32], strides = [1, 1]} : vector<2x96xf32> to vector<2x32xf32>
    %148 = math.tanh %146 : vector<2x32xf32>
    %149 = arith.mulf %147, %148 : vector<2x32xf32>
    %150 = vector.extract_strided_slice %139 {offsets = [0, 32], sizes = [2, 32], strides = [1, 1]} : vector<2x96xf32> to vector<2x32xf32>
    %151 = arith.mulf %150, %103 : vector<2x32xf32>
    %152 = vector.extract_strided_slice %139 {offsets = [0, 0], sizes = [2, 32], strides = [1, 1]} : vector<2x96xf32> to vector<2x32xf32>
    %153 = arith.mulf %152, %141 : vector<2x32xf32>
    %154 = arith.addf %151, %153 : vector<2x32xf32>
    %155 = vector.extract_strided_slice %139 {offsets = [0, 64], sizes = [2, 32], strides = [1, 1]} : vector<2x96xf32> to vector<2x32xf32>
    %156 = math.tanh %154 : vector<2x32xf32>
    %157 = arith.mulf %155, %156 : vector<2x32xf32>
    %158 = arith.index_cast %c2_i32 : i32 to index
    %c0_48 = arith.constant 0 : index
    %c0_49 = arith.constant 0 : index
    %159 = vector.load %arg10[%158, %c0_48, %c0_49] : memref<8x2x32xf32, #tpu.memory_space<vmem>>, vector<1x2x32xf32>
    %160 = vector.shape_cast %159 : vector<1x2x32xf32> to vector<2x32xf32>
    %161 = vector.shape_cast %149 : vector<2x32xf32> to vector<1x2x32xf32>
    tpu.vector_store %arg10[%158, %c0_48, %c0_49], %161 {strides = array<i32>} : memref<8x2x32xf32, #tpu.memory_space<vmem>>, vector<1x2x32xf32>,
    %162 = arith.index_cast %115 : i32 to index
    %c0_50 = arith.constant 0 : index
    %c0_51 = arith.constant 0 : index
    %163 = vector.load %arg11[%162, %c0_50, %c0_51] : memref<8x2x32xf32, #tpu.memory_space<vmem>>, vector<1x2x32xf32>
    %164 = vector.shape_cast %163 : vector<1x2x32xf32> to vector<2x32xf32>
    %165 = vector.shape_cast %157 : vector<2x32xf32> to vector<1x2x32xf32>
    tpu.vector_store %arg11[%162, %c0_50, %c0_51], %165 {strides = array<i32>} : memref<8x2x32xf32, #tpu.memory_space<vmem>>, vector<1x2x32xf32>,
    %c3_i32 = arith.constant 3 : i32
    %c7_i32_52 = arith.constant 7 : i32
    %166 = arith.subi %c7_i32_52, %c3_i32 : i32
    %167 = arith.index_cast %c3_i32 : i32 to index
    %c0_53 = arith.constant 0 : index
    %c0_54 = arith.constant 0 : index
    %168 = vector.load %arg9[%167, %c0_53, %c0_54] : memref<8x2x256xf32, #tpu.memory_space<vmem>>, vector<1x2x128xf32>
    %169 = vector.shape_cast %168 : vector<1x2x128xf32> to vector<2x128xf32>
    %cst_55 = arith.constant dense<0.000000e+00> : vector<2x128xf32>
    %170 = tpu.matmul %149, %9, %cst_55 {dimension_numbers = #tpu.dot_dimension_numbers<[1], [0], [0], [1], [0, 0, 1, 1], [], []>} : vector<2x32xf32>, vector<32x128xf32>, vector<2x128xf32> -> vector<2x128xf32>
    %171 = arith.addf %169, %170 : vector<2x128xf32>
    %172 = arith.index_cast %166 : i32 to index
    %c0_56 = arith.constant 0 : index
    %c128_57 = arith.constant 128 : index
    %173 = vector.load %arg9[%172, %c0_56, %c128_57] : memref<8x2x256xf32, #tpu.memory_space<vmem>>, vector<1x2x128xf32>
    %174 = vector.shape_cast %173 : vector<1x2x128xf32> to vector<2x128xf32>
    %cst_58 = arith.constant dense<0.000000e+00> : vector<2x128xf32>
    %175 = tpu.matmul %157, %10, %cst_58 {dimension_numbers = #tpu.dot_dimension_numbers<[1], [0], [0], [1], [0, 0, 1, 1], [], []>} : vector<2x32xf32>, vector<32x128xf32>, vector<2x128xf32> -> vector<2x128xf32>
    %176 = arith.addf %174, %175 : vector<2x128xf32>
    %177 = vector.extract_strided_slice %171 {offsets = [0, 0], sizes = [2, 96], strides = [1, 1]} : vector<2x128xf32> to vector<2x96xf32>
    %178 = arith.negf %177 : vector<2x96xf32>
    %179 = math.exp %178 : vector<2x96xf32>
    %cst_59 = arith.constant 1.000000e+00 : f32
    %180 = vector.broadcast %cst_59 : f32 to vector<2x96xf32>
    %181 = arith.addf %180, %179 : vector<2x96xf32>
    %182 = arith.divf %180, %181 : vector<2x96xf32>
    %183 = vector.extract_strided_slice %171 {offsets = [0, 96], sizes = [2, 32], strides = [1, 1]} : vector<2x128xf32> to vector<2x32xf32>
    %184 = math.tanh %183 : vector<2x32xf32>
    %185 = vector.extract_strided_slice %176 {offsets = [0, 0], sizes = [2, 96], strides = [1, 1]} : vector<2x128xf32> to vector<2x96xf32>
    %186 = arith.negf %185 : vector<2x96xf32>
    %187 = math.exp %186 : vector<2x96xf32>
    %cst_60 = arith.constant 1.000000e+00 : f32
    %188 = vector.broadcast %cst_60 : f32 to vector<2x96xf32>
    %189 = arith.addf %188, %187 : vector<2x96xf32>
    %190 = arith.divf %188, %189 : vector<2x96xf32>
    %191 = vector.extract_strided_slice %176 {offsets = [0, 96], sizes = [2, 32], strides = [1, 1]} : vector<2x128xf32> to vector<2x32xf32>
    %192 = math.tanh %191 : vector<2x32xf32>
    %193 = vector.extract_strided_slice %182 {offsets = [0, 32], sizes = [2, 32], strides = [1, 1]} : vector<2x96xf32> to vector<2x32xf32>
    %194 = arith.mulf %193, %146 : vector<2x32xf32>
    %195 = vector.extract_strided_slice %182 {offsets = [0, 0], sizes = [2, 32], strides = [1, 1]} : vector<2x96xf32> to vector<2x32xf32>
    %196 = arith.mulf %195, %184 : vector<2x32xf32>
    %197 = arith.addf %194, %196 : vector<2x32xf32>
    %198 = vector.extract_strided_slice %182 {offsets = [0, 64], sizes = [2, 32], strides = [1, 1]} : vector<2x96xf32> to vector<2x32xf32>
    %199 = math.tanh %197 : vector<2x32xf32>
    %200 = arith.mulf %198, %199 : vector<2x32xf32>
    %201 = vector.extract_strided_slice %190 {offsets = [0, 32], sizes = [2, 32], strides = [1, 1]} : vector<2x96xf32> to vector<2x32xf32>
    %202 = arith.mulf %201, %154 : vector<2x32xf32>
    %203 = vector.extract_strided_slice %190 {offsets = [0, 0], sizes = [2, 32], strides = [1, 1]} : vector<2x96xf32> to vector<2x32xf32>
    %204 = arith.mulf %203, %192 : vector<2x32xf32>
    %205 = arith.addf %202, %204 : vector<2x32xf32>
    %206 = vector.extract_strided_slice %190 {offsets = [0, 64], sizes = [2, 32], strides = [1, 1]} : vector<2x96xf32> to vector<2x32xf32>
    %207 = math.tanh %205 : vector<2x32xf32>
    %208 = arith.mulf %206, %207 : vector<2x32xf32>
    %209 = arith.index_cast %c3_i32 : i32 to index
    %c0_61 = arith.constant 0 : index
    %c0_62 = arith.constant 0 : index
    %210 = vector.load %arg10[%209, %c0_61, %c0_62] : memref<8x2x32xf32, #tpu.memory_space<vmem>>, vector<1x2x32xf32>
    %211 = vector.shape_cast %210 : vector<1x2x32xf32> to vector<2x32xf32>
    %212 = vector.shape_cast %200 : vector<2x32xf32> to vector<1x2x32xf32>
    tpu.vector_store %arg10[%209, %c0_61, %c0_62], %212 {strides = array<i32>} : memref<8x2x32xf32, #tpu.memory_space<vmem>>, vector<1x2x32xf32>,
    %213 = arith.index_cast %166 : i32 to index
    %c0_63 = arith.constant 0 : index
    %c0_64 = arith.constant 0 : index
    %214 = vector.load %arg11[%213, %c0_63, %c0_64] : memref<8x2x32xf32, #tpu.memory_space<vmem>>, vector<1x2x32xf32>
    %215 = vector.shape_cast %214 : vector<1x2x32xf32> to vector<2x32xf32>
    %216 = vector.shape_cast %208 : vector<2x32xf32> to vector<1x2x32xf32>
    tpu.vector_store %arg11[%213, %c0_63, %c0_64], %216 {strides = array<i32>} : memref<8x2x32xf32, #tpu.memory_space<vmem>>, vector<1x2x32xf32>,
    %c4_i32 = arith.constant 4 : i32
    %c7_i32_65 = arith.constant 7 : i32
    %217 = arith.subi %c7_i32_65, %c4_i32 : i32
    %218 = arith.index_cast %c4_i32 : i32 to index
    %c0_66 = arith.constant 0 : index
    %c0_67 = arith.constant 0 : index
    %219 = vector.load %arg9[%218, %c0_66, %c0_67] : memref<8x2x256xf32, #tpu.memory_space<vmem>>, vector<1x2x128xf32>
    %220 = vector.shape_cast %219 : vector<1x2x128xf32> to vector<2x128xf32>
    %cst_68 = arith.constant dense<0.000000e+00> : vector<2x128xf32>
    %221 = tpu.matmul %200, %9, %cst_68 {dimension_numbers = #tpu.dot_dimension_numbers<[1], [0], [0], [1], [0, 0, 1, 1], [], []>} : vector<2x32xf32>, vector<32x128xf32>, vector<2x128xf32> -> vector<2x128xf32>
    %222 = arith.addf %220, %221 : vector<2x128xf32>
    %223 = arith.index_cast %217 : i32 to index
    %c0_69 = arith.constant 0 : index
    %c128_70 = arith.constant 128 : index
    %224 = vector.load %arg9[%223, %c0_69, %c128_70] : memref<8x2x256xf32, #tpu.memory_space<vmem>>, vector<1x2x128xf32>
    %225 = vector.shape_cast %224 : vector<1x2x128xf32> to vector<2x128xf32>
    %cst_71 = arith.constant dense<0.000000e+00> : vector<2x128xf32>
    %226 = tpu.matmul %208, %10, %cst_71 {dimension_numbers = #tpu.dot_dimension_numbers<[1], [0], [0], [1], [0, 0, 1, 1], [], []>} : vector<2x32xf32>, vector<32x128xf32>, vector<2x128xf32> -> vector<2x128xf32>
    %227 = arith.addf %225, %226 : vector<2x128xf32>
    %228 = vector.extract_strided_slice %222 {offsets = [0, 0], sizes = [2, 96], strides = [1, 1]} : vector<2x128xf32> to vector<2x96xf32>
    %229 = arith.negf %228 : vector<2x96xf32>
    %230 = math.exp %229 : vector<2x96xf32>
    %cst_72 = arith.constant 1.000000e+00 : f32
    %231 = vector.broadcast %cst_72 : f32 to vector<2x96xf32>
    %232 = arith.addf %231, %230 : vector<2x96xf32>
    %233 = arith.divf %231, %232 : vector<2x96xf32>
    %234 = vector.extract_strided_slice %222 {offsets = [0, 96], sizes = [2, 32], strides = [1, 1]} : vector<2x128xf32> to vector<2x32xf32>
    %235 = math.tanh %234 : vector<2x32xf32>
    %236 = vector.extract_strided_slice %227 {offsets = [0, 0], sizes = [2, 96], strides = [1, 1]} : vector<2x128xf32> to vector<2x96xf32>
    %237 = arith.negf %236 : vector<2x96xf32>
    %238 = math.exp %237 : vector<2x96xf32>
    %cst_73 = arith.constant 1.000000e+00 : f32
    %239 = vector.broadcast %cst_73 : f32 to vector<2x96xf32>
    %240 = arith.addf %239, %238 : vector<2x96xf32>
    %241 = arith.divf %239, %240 : vector<2x96xf32>
    %242 = vector.extract_strided_slice %227 {offsets = [0, 96], sizes = [2, 32], strides = [1, 1]} : vector<2x128xf32> to vector<2x32xf32>
    %243 = math.tanh %242 : vector<2x32xf32>
    %244 = vector.extract_strided_slice %233 {offsets = [0, 32], sizes = [2, 32], strides = [1, 1]} : vector<2x96xf32> to vector<2x32xf32>
    %245 = arith.mulf %244, %197 : vector<2x32xf32>
    %246 = vector.extract_strided_slice %233 {offsets = [0, 0], sizes = [2, 32], strides = [1, 1]} : vector<2x96xf32> to vector<2x32xf32>
    %247 = arith.mulf %246, %235 : vector<2x32xf32>
    %248 = arith.addf %245, %247 : vector<2x32xf32>
    %249 = vector.extract_strided_slice %233 {offsets = [0, 64], sizes = [2, 32], strides = [1, 1]} : vector<2x96xf32> to vector<2x32xf32>
    %250 = math.tanh %248 : vector<2x32xf32>
    %251 = arith.mulf %249, %250 : vector<2x32xf32>
    %252 = vector.extract_strided_slice %241 {offsets = [0, 32], sizes = [2, 32], strides = [1, 1]} : vector<2x96xf32> to vector<2x32xf32>
    %253 = arith.mulf %252, %205 : vector<2x32xf32>
    %254 = vector.extract_strided_slice %241 {offsets = [0, 0], sizes = [2, 32], strides = [1, 1]} : vector<2x96xf32> to vector<2x32xf32>
    %255 = arith.mulf %254, %243 : vector<2x32xf32>
    %256 = arith.addf %253, %255 : vector<2x32xf32>
    %257 = vector.extract_strided_slice %241 {offsets = [0, 64], sizes = [2, 32], strides = [1, 1]} : vector<2x96xf32> to vector<2x32xf32>
    %258 = math.tanh %256 : vector<2x32xf32>
    %259 = arith.mulf %257, %258 : vector<2x32xf32>
    %260 = arith.index_cast %c4_i32 : i32 to index
    %c0_74 = arith.constant 0 : index
    %c0_75 = arith.constant 0 : index
    %261 = vector.load %arg10[%260, %c0_74, %c0_75] : memref<8x2x32xf32, #tpu.memory_space<vmem>>, vector<1x2x32xf32>
    %262 = vector.shape_cast %261 : vector<1x2x32xf32> to vector<2x32xf32>
    %263 = vector.shape_cast %251 : vector<2x32xf32> to vector<1x2x32xf32>
    tpu.vector_store %arg10[%260, %c0_74, %c0_75], %263 {strides = array<i32>} : memref<8x2x32xf32, #tpu.memory_space<vmem>>, vector<1x2x32xf32>,
    %264 = arith.index_cast %217 : i32 to index
    %c0_76 = arith.constant 0 : index
    %c0_77 = arith.constant 0 : index
    %265 = vector.load %arg11[%264, %c0_76, %c0_77] : memref<8x2x32xf32, #tpu.memory_space<vmem>>, vector<1x2x32xf32>
    %266 = vector.shape_cast %265 : vector<1x2x32xf32> to vector<2x32xf32>
    %267 = vector.shape_cast %259 : vector<2x32xf32> to vector<1x2x32xf32>
    tpu.vector_store %arg11[%264, %c0_76, %c0_77], %267 {strides = array<i32>} : memref<8x2x32xf32, #tpu.memory_space<vmem>>, vector<1x2x32xf32>,
    %c5_i32 = arith.constant 5 : i32
    %c7_i32_78 = arith.constant 7 : i32
    %268 = arith.subi %c7_i32_78, %c5_i32 : i32
    %269 = arith.index_cast %c5_i32 : i32 to index
    %c0_79 = arith.constant 0 : index
    %c0_80 = arith.constant 0 : index
    %270 = vector.load %arg9[%269, %c0_79, %c0_80] : memref<8x2x256xf32, #tpu.memory_space<vmem>>, vector<1x2x128xf32>
    %271 = vector.shape_cast %270 : vector<1x2x128xf32> to vector<2x128xf32>
    %cst_81 = arith.constant dense<0.000000e+00> : vector<2x128xf32>
    %272 = tpu.matmul %251, %9, %cst_81 {dimension_numbers = #tpu.dot_dimension_numbers<[1], [0], [0], [1], [0, 0, 1, 1], [], []>} : vector<2x32xf32>, vector<32x128xf32>, vector<2x128xf32> -> vector<2x128xf32>
    %273 = arith.addf %271, %272 : vector<2x128xf32>
    %274 = arith.index_cast %268 : i32 to index
    %c0_82 = arith.constant 0 : index
    %c128_83 = arith.constant 128 : index
    %275 = vector.load %arg9[%274, %c0_82, %c128_83] : memref<8x2x256xf32, #tpu.memory_space<vmem>>, vector<1x2x128xf32>
    %276 = vector.shape_cast %275 : vector<1x2x128xf32> to vector<2x128xf32>
    %cst_84 = arith.constant dense<0.000000e+00> : vector<2x128xf32>
    %277 = tpu.matmul %259, %10, %cst_84 {dimension_numbers = #tpu.dot_dimension_numbers<[1], [0], [0], [1], [0, 0, 1, 1], [], []>} : vector<2x32xf32>, vector<32x128xf32>, vector<2x128xf32> -> vector<2x128xf32>
    %278 = arith.addf %276, %277 : vector<2x128xf32>
    %279 = vector.extract_strided_slice %273 {offsets = [0, 0], sizes = [2, 96], strides = [1, 1]} : vector<2x128xf32> to vector<2x96xf32>
    %280 = arith.negf %279 : vector<2x96xf32>
    %281 = math.exp %280 : vector<2x96xf32>
    %cst_85 = arith.constant 1.000000e+00 : f32
    %282 = vector.broadcast %cst_85 : f32 to vector<2x96xf32>
    %283 = arith.addf %282, %281 : vector<2x96xf32>
    %284 = arith.divf %282, %283 : vector<2x96xf32>
    %285 = vector.extract_strided_slice %273 {offsets = [0, 96], sizes = [2, 32], strides = [1, 1]} : vector<2x128xf32> to vector<2x32xf32>
    %286 = math.tanh %285 : vector<2x32xf32>
    %287 = vector.extract_strided_slice %278 {offsets = [0, 0], sizes = [2, 96], strides = [1, 1]} : vector<2x128xf32> to vector<2x96xf32>
    %288 = arith.negf %287 : vector<2x96xf32>
    %289 = math.exp %288 : vector<2x96xf32>
    %cst_86 = arith.constant 1.000000e+00 : f32
    %290 = vector.broadcast %cst_86 : f32 to vector<2x96xf32>
    %291 = arith.addf %290, %289 : vector<2x96xf32>
    %292 = arith.divf %290, %291 : vector<2x96xf32>
    %293 = vector.extract_strided_slice %278 {offsets = [0, 96], sizes = [2, 32], strides = [1, 1]} : vector<2x128xf32> to vector<2x32xf32>
    %294 = math.tanh %293 : vector<2x32xf32>
    %295 = vector.extract_strided_slice %284 {offsets = [0, 32], sizes = [2, 32], strides = [1, 1]} : vector<2x96xf32> to vector<2x32xf32>
    %296 = arith.mulf %295, %248 : vector<2x32xf32>
    %297 = vector.extract_strided_slice %284 {offsets = [0, 0], sizes = [2, 32], strides = [1, 1]} : vector<2x96xf32> to vector<2x32xf32>
    %298 = arith.mulf %297, %286 : vector<2x32xf32>
    %299 = arith.addf %296, %298 : vector<2x32xf32>
    %300 = vector.extract_strided_slice %284 {offsets = [0, 64], sizes = [2, 32], strides = [1, 1]} : vector<2x96xf32> to vector<2x32xf32>
    %301 = math.tanh %299 : vector<2x32xf32>
    %302 = arith.mulf %300, %301 : vector<2x32xf32>
    %303 = vector.extract_strided_slice %292 {offsets = [0, 32], sizes = [2, 32], strides = [1, 1]} : vector<2x96xf32> to vector<2x32xf32>
    %304 = arith.mulf %303, %256 : vector<2x32xf32>
    %305 = vector.extract_strided_slice %292 {offsets = [0, 0], sizes = [2, 32], strides = [1, 1]} : vector<2x96xf32> to vector<2x32xf32>
    %306 = arith.mulf %305, %294 : vector<2x32xf32>
    %307 = arith.addf %304, %306 : vector<2x32xf32>
    %308 = vector.extract_strided_slice %292 {offsets = [0, 64], sizes = [2, 32], strides = [1, 1]} : vector<2x96xf32> to vector<2x32xf32>
    %309 = math.tanh %307 : vector<2x32xf32>
    %310 = arith.mulf %308, %309 : vector<2x32xf32>
    %311 = arith.index_cast %c5_i32 : i32 to index
    %c0_87 = arith.constant 0 : index
    %c0_88 = arith.constant 0 : index
    %312 = vector.load %arg10[%311, %c0_87, %c0_88] : memref<8x2x32xf32, #tpu.memory_space<vmem>>, vector<1x2x32xf32>
    %313 = vector.shape_cast %312 : vector<1x2x32xf32> to vector<2x32xf32>
    %314 = vector.shape_cast %302 : vector<2x32xf32> to vector<1x2x32xf32>
    tpu.vector_store %arg10[%311, %c0_87, %c0_88], %314 {strides = array<i32>} : memref<8x2x32xf32, #tpu.memory_space<vmem>>, vector<1x2x32xf32>,
    %315 = arith.index_cast %268 : i32 to index
    %c0_89 = arith.constant 0 : index
    %c0_90 = arith.constant 0 : index
    %316 = vector.load %arg11[%315, %c0_89, %c0_90] : memref<8x2x32xf32, #tpu.memory_space<vmem>>, vector<1x2x32xf32>
    %317 = vector.shape_cast %316 : vector<1x2x32xf32> to vector<2x32xf32>
    %318 = vector.shape_cast %310 : vector<2x32xf32> to vector<1x2x32xf32>
    tpu.vector_store %arg11[%315, %c0_89, %c0_90], %318 {strides = array<i32>} : memref<8x2x32xf32, #tpu.memory_space<vmem>>, vector<1x2x32xf32>,
    %c6_i32 = arith.constant 6 : i32
    %c7_i32_91 = arith.constant 7 : i32
    %319 = arith.subi %c7_i32_91, %c6_i32 : i32
    %320 = arith.index_cast %c6_i32 : i32 to index
    %c0_92 = arith.constant 0 : index
    %c0_93 = arith.constant 0 : index
    %321 = vector.load %arg9[%320, %c0_92, %c0_93] : memref<8x2x256xf32, #tpu.memory_space<vmem>>, vector<1x2x128xf32>
    %322 = vector.shape_cast %321 : vector<1x2x128xf32> to vector<2x128xf32>
    %cst_94 = arith.constant dense<0.000000e+00> : vector<2x128xf32>
    %323 = tpu.matmul %302, %9, %cst_94 {dimension_numbers = #tpu.dot_dimension_numbers<[1], [0], [0], [1], [0, 0, 1, 1], [], []>} : vector<2x32xf32>, vector<32x128xf32>, vector<2x128xf32> -> vector<2x128xf32>
    %324 = arith.addf %322, %323 : vector<2x128xf32>
    %325 = arith.index_cast %319 : i32 to index
    %c0_95 = arith.constant 0 : index
    %c128_96 = arith.constant 128 : index
    %326 = vector.load %arg9[%325, %c0_95, %c128_96] : memref<8x2x256xf32, #tpu.memory_space<vmem>>, vector<1x2x128xf32>
    %327 = vector.shape_cast %326 : vector<1x2x128xf32> to vector<2x128xf32>
    %cst_97 = arith.constant dense<0.000000e+00> : vector<2x128xf32>
    %328 = tpu.matmul %310, %10, %cst_97 {dimension_numbers = #tpu.dot_dimension_numbers<[1], [0], [0], [1], [0, 0, 1, 1], [], []>} : vector<2x32xf32>, vector<32x128xf32>, vector<2x128xf32> -> vector<2x128xf32>
    %329 = arith.addf %327, %328 : vector<2x128xf32>
    %330 = vector.extract_strided_slice %324 {offsets = [0, 0], sizes = [2, 96], strides = [1, 1]} : vector<2x128xf32> to vector<2x96xf32>
    %331 = arith.negf %330 : vector<2x96xf32>
    %332 = math.exp %331 : vector<2x96xf32>
    %cst_98 = arith.constant 1.000000e+00 : f32
    %333 = vector.broadcast %cst_98 : f32 to vector<2x96xf32>
    %334 = arith.addf %333, %332 : vector<2x96xf32>
    %335 = arith.divf %333, %334 : vector<2x96xf32>
    %336 = vector.extract_strided_slice %324 {offsets = [0, 96], sizes = [2, 32], strides = [1, 1]} : vector<2x128xf32> to vector<2x32xf32>
    %337 = math.tanh %336 : vector<2x32xf32>
    %338 = vector.extract_strided_slice %329 {offsets = [0, 0], sizes = [2, 96], strides = [1, 1]} : vector<2x128xf32> to vector<2x96xf32>
    %339 = arith.negf %338 : vector<2x96xf32>
    %340 = math.exp %339 : vector<2x96xf32>
    %cst_99 = arith.constant 1.000000e+00 : f32
    %341 = vector.broadcast %cst_99 : f32 to vector<2x96xf32>
    %342 = arith.addf %341, %340 : vector<2x96xf32>
    %343 = arith.divf %341, %342 : vector<2x96xf32>
    %344 = vector.extract_strided_slice %329 {offsets = [0, 96], sizes = [2, 32], strides = [1, 1]} : vector<2x128xf32> to vector<2x32xf32>
    %345 = math.tanh %344 : vector<2x32xf32>
    %346 = vector.extract_strided_slice %335 {offsets = [0, 32], sizes = [2, 32], strides = [1, 1]} : vector<2x96xf32> to vector<2x32xf32>
    %347 = arith.mulf %346, %299 : vector<2x32xf32>
    %348 = vector.extract_strided_slice %335 {offsets = [0, 0], sizes = [2, 32], strides = [1, 1]} : vector<2x96xf32> to vector<2x32xf32>
    %349 = arith.mulf %348, %337 : vector<2x32xf32>
    %350 = arith.addf %347, %349 : vector<2x32xf32>
    %351 = vector.extract_strided_slice %335 {offsets = [0, 64], sizes = [2, 32], strides = [1, 1]} : vector<2x96xf32> to vector<2x32xf32>
    %352 = math.tanh %350 : vector<2x32xf32>
    %353 = arith.mulf %351, %352 : vector<2x32xf32>
    %354 = vector.extract_strided_slice %343 {offsets = [0, 32], sizes = [2, 32], strides = [1, 1]} : vector<2x96xf32> to vector<2x32xf32>
    %355 = arith.mulf %354, %307 : vector<2x32xf32>
    %356 = vector.extract_strided_slice %343 {offsets = [0, 0], sizes = [2, 32], strides = [1, 1]} : vector<2x96xf32> to vector<2x32xf32>
    %357 = arith.mulf %356, %345 : vector<2x32xf32>
    %358 = arith.addf %355, %357 : vector<2x32xf32>
    %359 = vector.extract_strided_slice %343 {offsets = [0, 64], sizes = [2, 32], strides = [1, 1]} : vector<2x96xf32> to vector<2x32xf32>
    %360 = math.tanh %358 : vector<2x32xf32>
    %361 = arith.mulf %359, %360 : vector<2x32xf32>
    %362 = arith.index_cast %c6_i32 : i32 to index
    %c0_100 = arith.constant 0 : index
    %c0_101 = arith.constant 0 : index
    %363 = vector.load %arg10[%362, %c0_100, %c0_101] : memref<8x2x32xf32, #tpu.memory_space<vmem>>, vector<1x2x32xf32>
    %364 = vector.shape_cast %363 : vector<1x2x32xf32> to vector<2x32xf32>
    %365 = vector.shape_cast %353 : vector<2x32xf32> to vector<1x2x32xf32>
    tpu.vector_store %arg10[%362, %c0_100, %c0_101], %365 {strides = array<i32>} : memref<8x2x32xf32, #tpu.memory_space<vmem>>, vector<1x2x32xf32>,
    %366 = arith.index_cast %319 : i32 to index
    %c0_102 = arith.constant 0 : index
    %c0_103 = arith.constant 0 : index
    %367 = vector.load %arg11[%366, %c0_102, %c0_103] : memref<8x2x32xf32, #tpu.memory_space<vmem>>, vector<1x2x32xf32>
    %368 = vector.shape_cast %367 : vector<1x2x32xf32> to vector<2x32xf32>
    %369 = vector.shape_cast %361 : vector<2x32xf32> to vector<1x2x32xf32>
    tpu.vector_store %arg11[%366, %c0_102, %c0_103], %369 {strides = array<i32>} : memref<8x2x32xf32, #tpu.memory_space<vmem>>, vector<1x2x32xf32>,
    %c7_i32_104 = arith.constant 7 : i32
    %c7_i32_105 = arith.constant 7 : i32
    %370 = arith.subi %c7_i32_105, %c7_i32_104 : i32
    %371 = arith.index_cast %c7_i32_104 : i32 to index
    %c0_106 = arith.constant 0 : index
    %c0_107 = arith.constant 0 : index
    %372 = vector.load %arg9[%371, %c0_106, %c0_107] : memref<8x2x256xf32, #tpu.memory_space<vmem>>, vector<1x2x128xf32>
    %373 = vector.shape_cast %372 : vector<1x2x128xf32> to vector<2x128xf32>
    %cst_108 = arith.constant dense<0.000000e+00> : vector<2x128xf32>
    %374 = tpu.matmul %353, %9, %cst_108 {dimension_numbers = #tpu.dot_dimension_numbers<[1], [0], [0], [1], [0, 0, 1, 1], [], []>} : vector<2x32xf32>, vector<32x128xf32>, vector<2x128xf32> -> vector<2x128xf32>
    %375 = arith.addf %373, %374 : vector<2x128xf32>
    %376 = arith.index_cast %370 : i32 to index
    %c0_109 = arith.constant 0 : index
    %c128_110 = arith.constant 128 : index
    %377 = vector.load %arg9[%376, %c0_109, %c128_110] : memref<8x2x256xf32, #tpu.memory_space<vmem>>, vector<1x2x128xf32>
    %378 = vector.shape_cast %377 : vector<1x2x128xf32> to vector<2x128xf32>
    %cst_111 = arith.constant dense<0.000000e+00> : vector<2x128xf32>
    %379 = tpu.matmul %361, %10, %cst_111 {dimension_numbers = #tpu.dot_dimension_numbers<[1], [0], [0], [1], [0, 0, 1, 1], [], []>} : vector<2x32xf32>, vector<32x128xf32>, vector<2x128xf32> -> vector<2x128xf32>
    %380 = arith.addf %378, %379 : vector<2x128xf32>
    %381 = vector.extract_strided_slice %375 {offsets = [0, 0], sizes = [2, 96], strides = [1, 1]} : vector<2x128xf32> to vector<2x96xf32>
    %382 = arith.negf %381 : vector<2x96xf32>
    %383 = math.exp %382 : vector<2x96xf32>
    %cst_112 = arith.constant 1.000000e+00 : f32
    %384 = vector.broadcast %cst_112 : f32 to vector<2x96xf32>
    %385 = arith.addf %384, %383 : vector<2x96xf32>
    %386 = arith.divf %384, %385 : vector<2x96xf32>
    %387 = vector.extract_strided_slice %375 {offsets = [0, 96], sizes = [2, 32], strides = [1, 1]} : vector<2x128xf32> to vector<2x32xf32>
    %388 = math.tanh %387 : vector<2x32xf32>
    %389 = vector.extract_strided_slice %380 {offsets = [0, 0], sizes = [2, 96], strides = [1, 1]} : vector<2x128xf32> to vector<2x96xf32>
    %390 = arith.negf %389 : vector<2x96xf32>
    %391 = math.exp %390 : vector<2x96xf32>
    %cst_113 = arith.constant 1.000000e+00 : f32
    %392 = vector.broadcast %cst_113 : f32 to vector<2x96xf32>
    %393 = arith.addf %392, %391 : vector<2x96xf32>
    %394 = arith.divf %392, %393 : vector<2x96xf32>
    %395 = vector.extract_strided_slice %380 {offsets = [0, 96], sizes = [2, 32], strides = [1, 1]} : vector<2x128xf32> to vector<2x32xf32>
    %396 = math.tanh %395 : vector<2x32xf32>
    %397 = vector.extract_strided_slice %386 {offsets = [0, 32], sizes = [2, 32], strides = [1, 1]} : vector<2x96xf32> to vector<2x32xf32>
    %398 = arith.mulf %397, %350 : vector<2x32xf32>
    %399 = vector.extract_strided_slice %386 {offsets = [0, 0], sizes = [2, 32], strides = [1, 1]} : vector<2x96xf32> to vector<2x32xf32>
    %400 = arith.mulf %399, %388 : vector<2x32xf32>
    %401 = arith.addf %398, %400 : vector<2x32xf32>
    %402 = vector.extract_strided_slice %386 {offsets = [0, 64], sizes = [2, 32], strides = [1, 1]} : vector<2x96xf32> to vector<2x32xf32>
    %403 = math.tanh %401 : vector<2x32xf32>
    %404 = arith.mulf %402, %403 : vector<2x32xf32>
    %405 = vector.extract_strided_slice %394 {offsets = [0, 32], sizes = [2, 32], strides = [1, 1]} : vector<2x96xf32> to vector<2x32xf32>
    %406 = arith.mulf %405, %358 : vector<2x32xf32>
    %407 = vector.extract_strided_slice %394 {offsets = [0, 0], sizes = [2, 32], strides = [1, 1]} : vector<2x96xf32> to vector<2x32xf32>
    %408 = arith.mulf %407, %396 : vector<2x32xf32>
    %409 = arith.addf %406, %408 : vector<2x32xf32>
    %410 = vector.extract_strided_slice %394 {offsets = [0, 64], sizes = [2, 32], strides = [1, 1]} : vector<2x96xf32> to vector<2x32xf32>
    %411 = math.tanh %409 : vector<2x32xf32>
    %412 = arith.mulf %410, %411 : vector<2x32xf32>
    %413 = arith.index_cast %c7_i32_104 : i32 to index
    %c0_114 = arith.constant 0 : index
    %c0_115 = arith.constant 0 : index
    %414 = vector.load %arg10[%413, %c0_114, %c0_115] : memref<8x2x32xf32, #tpu.memory_space<vmem>>, vector<1x2x32xf32>
    %415 = vector.shape_cast %414 : vector<1x2x32xf32> to vector<2x32xf32>
    %416 = vector.shape_cast %404 : vector<2x32xf32> to vector<1x2x32xf32>
    tpu.vector_store %arg10[%413, %c0_114, %c0_115], %416 {strides = array<i32>} : memref<8x2x32xf32, #tpu.memory_space<vmem>>, vector<1x2x32xf32>,
    %417 = arith.index_cast %370 : i32 to index
    %c0_116 = arith.constant 0 : index
    %c0_117 = arith.constant 0 : index
    %418 = vector.load %arg11[%417, %c0_116, %c0_117] : memref<8x2x32xf32, #tpu.memory_space<vmem>>, vector<1x2x32xf32>
    %419 = vector.shape_cast %418 : vector<1x2x32xf32> to vector<2x32xf32>
    %420 = vector.shape_cast %412 : vector<2x32xf32> to vector<1x2x32xf32>
    tpu.vector_store %arg11[%417, %c0_116, %c0_117], %420 {strides = array<i32>} : memref<8x2x32xf32, #tpu.memory_space<vmem>>, vector<1x2x32xf32>,
    %c8_i32 = arith.constant 8 : i32
    %c0_118 = arith.constant 0 : index
    %c0_119 = arith.constant 0 : index
    %c0_120 = arith.constant 0 : index
    %421 = vector.load %arg10[%c0_118, %c0_119, %c0_120] : memref<8x2x32xf32, #tpu.memory_space<vmem>>, vector<8x2x32xf32>
    %422 = vector.shape_cast %421 : vector<8x2x32xf32> to vector<16x32xf32>
    %c0_121 = arith.constant 0 : index
    %c0_122 = arith.constant 0 : index
    %423 = vector.load %arg5[%c0_121, %c0_122] : memref<32x5xf32, #tpu.memory_space<vmem>>, vector<32x5xf32>
    %cst_123 = arith.constant dense<0.000000e+00> : vector<16x5xf32>
    %424 = tpu.matmul %422, %423, %cst_123 {dimension_numbers = #tpu.dot_dimension_numbers<[1], [0], [0], [1], [0, 0, 1, 1], [], []>} : vector<16x32xf32>, vector<32x5xf32>, vector<16x5xf32> -> vector<16x5xf32>
    %c0_124 = arith.constant 0 : index
    %c0_125 = arith.constant 0 : index
    %c0_126 = arith.constant 0 : index
    %425 = vector.load %arg11[%c0_124, %c0_125, %c0_126] : memref<8x2x32xf32, #tpu.memory_space<vmem>>, vector<8x2x32xf32>
    %426 = vector.shape_cast %425 : vector<8x2x32xf32> to vector<16x32xf32>
    %c0_127 = arith.constant 0 : index
    %c0_128 = arith.constant 0 : index
    %427 = vector.load %arg6[%c0_127, %c0_128] : memref<32x5xf32, #tpu.memory_space<vmem>>, vector<32x5xf32>
    %cst_129 = arith.constant dense<0.000000e+00> : vector<16x5xf32>
    %428 = tpu.matmul %426, %427, %cst_129 {dimension_numbers = #tpu.dot_dimension_numbers<[1], [0], [0], [1], [0, 0, 1, 1], [], []>} : vector<16x32xf32>, vector<32x5xf32>, vector<16x5xf32> -> vector<16x5xf32>
    %429 = arith.addf %424, %428 : vector<16x5xf32>
    %c0_130 = arith.constant 0 : index
    %c0_131 = arith.constant 0 : index
    %430 = vector.load %arg7[%c0_130, %c0_131] : memref<1x5xf32, #tpu.memory_space<vmem>>, vector<1x5xf32>
    %431 = vector.broadcast %430 : vector<1x5xf32> to vector<16x5xf32>
    %432 = arith.addf %429, %431 : vector<16x5xf32>
    %433 = vector.shape_cast %432 : vector<16x5xf32> to vector<8x2x5xf32>
    %c0_132 = arith.constant 0 : index
    %c0_133 = arith.constant 0 : index
    %c0_134 = arith.constant 0 : index
    %434 = vector.load %arg8[%c0_132, %c0_133, %c0_134] : memref<8x2x5xf32, #tpu.memory_space<vmem>>, vector<8x2x5xf32>
    tpu.vector_store %arg8[%c0_132, %c0_133, %c0_134], %433 {strides = array<i32>} : memref<8x2x5xf32, #tpu.memory_space<vmem>>, vector<8x2x5xf32>,
    return
  }
}

</mosaic_0001>

<bundles_post_ra>
// kernel: tpu_custom_call.1
= control target key start
LH: loop header
LB: loop body
LE: loop exit
PB: predicated region body
PF: predicated region fallthrough
CT: control target
= control target key end

     0   :  { %13 = vsyncpa [#allocation6], 0  ;;  %s2980_s27 = smov [#allocation5]   ;;  %s3455_s0 = inlined_call_operand.vmem [shape: f32[8,2,16], index: 0, kind: input, shape index: {}]   ;;  %s3456_s1 = inlined_call_operand.vmem [shape: f32[16,256], index: 1, kind: input, shape index: {}]   ;;  %s3457_s2 = inlined_call_operand.vmem [shape: f32[32,128], index: 2, kind: input, shape index: {}]   ;;  %s3458_s3 = inlined_call_operand.hbm [shape: f32[32,128], index: 3, kind: input, shape index: {}]   ;;  %s3459_s4 = inlined_call_operand.vmem [shape: f32[1,256], index: 4, kind: input, shape index: {}]   ;;  %s3460_s5 = inlined_call_operand.vmem [shape: f32[32,5], index: 5, kind: input, shape index: {}]   ;;  %s3461_s6 = inlined_call_operand.vmem [shape: f32[32,5], index: 6, kind: input, shape index: {}]   ;;  %s3462_s7 = inlined_call_operand.vmem [shape: f32[1,5], index: 7, kind: input, shape index: {}]   ;;  %s3463_s8 = inlined_call_operand.vmem [shape: f32[8,2,5], index: 8, kind: output, shape index: {}]  }
   0x1   :  { %s25_s28 = sshll.u32 %s2980_s27, 4  ;;  %s2956_s9 = scalar_lea.hbm %s3458_s3, 512  ;;  %s26_s28 = int_to_ptr.vmem [resolvable:$true] %s25_s28 }
   0x2   :  { %p2957_p0 = scmp.ne.s32.totalorder %s3458_s3, %s2956_s9  ;;  %p2960_p1 = scmp.lt.u32.totalorder %s2956_s9, %s3458_s3 }
   0x4   :  { %p2962_p2 = pnand %p2960_p1, %p2957_p0 }
   0x6   :  { %2965 = shalt.err (!%p2962_p2)
}
   0x7   :  { %s2966_s14 = scalar_lea.vmem %s26_s28, 512  ;;  %p2971_p4 = scmp.lt.s32.totalorder %s26_s28, %s26_s28 }
   0x8   :  { %p2967_p3 = scmp.ne.s32.totalorder %s26_s28, %s2966_s14  ;;  %p2972_p5 = scmp.lt.s32.totalorder %s2966_s14, %s2966_s14 }
   0xa   :  { %p2973_p6 = por %p2972_p5, %p2971_p4 }
   0xc   :  { %p2974_p7 = pnand %p2973_p6, %p2967_p3 }
   0xe   :  { %2977 = shalt.err (!%p2974_p7)
}
   0xf   :  { %s2981_s15 = smov 128   ;;  %s2982_s16 = smov 8  }
  0x10   :  { %31 = dma.hbm_to_vmem [thread:$0]  %s3458_s3, 512, %s26_s28, [#allocation6], %s2981_s15, %s2981_s15, %s2982_s16  }
  0x11   :  { %2978 = dma.done.wait [#allocation6], 512  }
  0x12   :  { %2979 = vsyncadd [#allocation6], 4294966784  ;;  %v57_v0 = vlaneseq  ;;  %v2983_v1 = vmov 0.0   ;;  %v2984_v2 = vmov 1983009808   ;;  %v2985_v4 = vmov 0.0|0.0  }
  0x13   :  { %178 = vmatprep.mubr.f32.mxu0 %v2983_v1  ;;  %v78_v3 = vunpack.c.l.s4 %v2984_v2  ;;  %2717 = vmatprep.subr.bf16.mxu1 %v2985_v4  ;;  %vm2986_vm0 = vmmov 0   ;;  %v52_v7 = vld [vmem:[%s3456_s1 + $0x8] sm:$0xff]  ;;  %v54_v8 = vld [vmem:[%s3456_s1 + $0x18] sm:$0xff]  ;;  %v51_v9 = vld [vmem:[%s3456_s1] sm:$0xff]  ;;  %vm109_vm1 = vcmask 130048   ;;  %s2988_s26 = smov 64  }
  0x14   :  { %2533 = vmatprep.mubr.msk.f32.mxu1 %vm2986_vm0, %v2983_v1  ;;  %v3050_v5 = vshrl.u32 %v57_v0, 7  ;;  %v2701_v11 = vpack.c.bf16 %v54_v8, %v52_v7  ;;  %v53_v12 = vld [vmem:[%s3456_s1 + $0x10] sm:$0xff]  ;;  %v43_v13 = vld [vmem:[%s3455_s0] sm:$0x3]  ;;  %v44_v14 = vld [vmem:[%s3455_s0 + $0x2] sm:$0x3] }
  0x15   :  { %v79_v6 = vunpack.c.0.s8 %v78_v3  ;;  %v2703_v15 = vpack.c.bf16 %v53_v12, %v51_v9  ;;  %v45_v16 = vld [vmem:[%s3455_s0 + $0x4] sm:$0x3]  ;;  %v46_v17 = vld [vmem:[%s3455_s0 + $0x6] sm:$0x3]  ;;  %v75_v18 = vcombine.low %v43_v13, %v44_v14  ;;  %v47_v19 = vld [vmem:[%s3455_s0 + $0x8] sm:$0x3] }
  0x16   :  { %2702 = vmatprep.subr.bf16.mxu0 %v2701_v11  ;;  %v76_v20 = vcombine.low %v45_v16, %v46_v17  ;;  %v48_v21 = vld [vmem:[%s3455_s0 + $0xa] sm:$0x3]  ;;  %v49_v22 = vld [vmem:[%s3455_s0 + $0xc] sm:$0x3]  ;;  %v50_v23 = vld [vmem:[%s3455_s0 + $0xe] sm:$0x3] }
  0x17   :  { %v3062_v10 = vsub.s32 %v79_v6, %v3050_v5  ;;  %2704 = vmatpush1.bf16.msra.mxu0 %v2703_v15  ;;  %v92_v25 = vcombine.low %v47_v19, %v48_v21  ;;  %v93_v26 = vcombine.low %v49_v22, %v50_v23  ;;  %v247_v27 = vld [vmem:[%s3457_s2] sm:$0xff]  ;;  %v248_v28 = vld [vmem:[%s3457_s2 + $0x8] sm:$0xff]  ;;  %v249_v33 = vld [vmem:[%s3457_s2 + $0x10] sm:$0xff]  ;;  %v59_v44 = vsub.s32 0, %v3050_v5 }
  0x18   :  { %2705 = vmatprep.subr.bf16.mxu0 %v2985_v4  ;;  %v3100_v30 = vpack.c.bf16 %v248_v28, %v247_v27  ;;  %v250_v34 = vld [vmem:[%s3457_s2 + $0x18] sm:$0xff]  ;;  %v251_v38 = vld [vmem:[#allocation5] sm:$0xff]  ;;  %v252_v39 = vld [vmem:[#allocation5 + $0x8] sm:$0xff]  ;;  %v63_v46 = vsub.s32 1, %v3050_v5  ;;  %vm463_vm2 = vcmask 254976   ;;  %vm256_vm3 = vcmask 261120  }
  0x19   :  { %v83_v24 = vrot.slane %v75_v18, %v3062_v10  ;;  %v90_v29 = vrot.slane %v76_v20, %v3062_v10  ;;  %v100_v31 = vrot.slane %v92_v25, %v3062_v10  ;;  %v107_v32 = vrot.slane %v93_v26, %v3062_v10  ;;  %v253_v41 = vld [vmem:[#allocation5 + $0x10] sm:$0xff]  ;;  %v254_v42 = vld [vmem:[#allocation5 + $0x18] sm:$0xff]  ;;  %v55_v45 = vld [vmem:[%s3459_s4] sm:$0x3]  ;;  %s2987_s4 = smov 32  }
  0x1a   :  { %2719 = vmatpush3.bf16.msra.mxu1 %v3100_v30  ;;  %v3113_v37 = vpack.c.bf16 %v250_v34, %v249_v33  ;;  %v3124_v40 = vpack.c.bf16 %v252_v39, %v251_v38  ;;  %v3129_v43 = vpack.c.bf16 %v254_v42, %v253_v41  ;;  %v60_v47 = vrot.slane %v55_v45, %v59_v44 }
  0x1b   :  { %v91_v35 = vcombine.low %v83_v24, %v90_v29  ;;  %2720 = vmatprep.subr.bf16.mxu1 %v2985_v4  ;;  %v108_v36 = vcombine.low %v100_v31, %v107_v32  ;;  %v64_v48 = vrot.slane %v55_v45, %v63_v46  ;;  %vm2356_vm4 = vcmask 33792  }
  0x1d   :  { %2370 = vmatmul.mubr.msk.f32.vlgmr.msra.gmra.mrb[0].mxu0 %vm109_vm1, %v91_v35 }
  0x1e   :  { %184 = vmatprep.mubr.f32.mxu0 %v2983_v1  ;;  %2707 = vmatpush3.bf16.msra.mxu0 %v3100_v30 }
  0x1f   :  { %2708 = vmatprep.subr.bf16.mxu0 %v2985_v4  ;;  %2722 = vmatpush3.bf16.msra.mxu1 %v3113_v37 }
  0x20   :  { %2729 = vmatprep.subr.bf16.mxu1 %v2985_v4 }
  0x21   :  { %2371 = vmatmul.mubr.msk.f32.gmra.mrb[2].mxu0 %vm109_vm1, %v108_v36 }
  0x22   :  { %2710 = vmatpush3.bf16.msra.mxu0 %v3113_v37  ;;  %2511 = vmatprep.mubr.msk.f32.mxu0 %vm2986_vm0, %v2983_v1 }
  0x23   :  { %2711 = vmatprep.subr.bf16.mxu0 %v2985_v4 }
  0x25   :  { %2512 = vmatmul.mubr.f32.vlgmr.msra.gmra.mrb[4].mxu0 %v2983_v1 }
  0x26   :  { %2713 = vmatpush3.bf16.msra.mxu0 %v3124_v40  ;;  %2522 = vmatprep.mubr.msk.f32.mxu0 %vm2986_vm0, %v2983_v1 }
  0x27   :  { %2714 = vmatprep.subr.bf16.mxu0 %v2985_v4 }
  0x2a   :  { %2716 = vmatpush3.bf16.msra.mxu0 %v3129_v43 }
  0x2b   :  { %2723 = vmatprep.subr.bf16.mxu0 %v2985_v4 }
  0x2d   :  { %2523 = vmatmul.mubr.f32.vlgmr.msra.gmra.mrb[6].mxu0 %v2983_v1 }
  0x2e   :  { %2725 = vmatpush3.bf16.msra.mxu0 %v3124_v40  ;;  %2544 = vmatprep.mubr.msk.f32.mxu0 %vm2986_vm0, %v2983_v1 }
  0x2f   :  { %2726 = vmatprep.subr.bf16.mxu0 %v2985_v4 }
  0x32   :  { %2728 = vmatpush3.bf16.msra.mxu0 %v3129_v43 }
  0x33   :  { %2735 = vmatprep.subr.bf16.mxu0 %v2985_v4 }
  0xf0   :  { %v180_v49 = vpop.f32.mrb[0].mxu0 }
  0xf1   :  { %v181_v50 = vadd.f32 %v180_v49, %v60_v47  ;;  %v182_v51 = vpop.f32.mrb[1].mxu0 }
  0xf2   :  { %v183_v52 = vadd.f32 %v182_v51, %v64_v48 }
  0xf4   :  { %v195_v53 = vcombine.low %v181_v50, %v183_v52  ;;  %v196_v54 = vcombine.high %v181_v50, %v183_v52  ;;  %v186_v55 = vpop.f32.mrb[2].mxu0 }
  0xf5   :  { %v187_v56 = vadd.f32 %v186_v55, %v60_v47  ;;  %v188_v57 = vpop.f32.mrb[3].mxu0 }
  0xf6   :  { %v203_v58 = vrot.slane %v195_v53, %v3062_v10  ;;  %v210_v59 = vrot.slane %v196_v54, %v3062_v10  ;;  %2372 = vst.sshfl [vmem:[#allocation2] sm:$0x33 pattern:$0x76325410] %v195_v53  ;;  %v189_v60 = vadd.f32 %v188_v57, %v64_v48 }
  0xf7   :  { %2373 = vst.sshfl [vmem:[#allocation2 + $0x8] sm:$0x33 pattern:$0x76325410] %v196_v54 }
  0xf8   :  { %v211_v61 = vcombine.high %v203_v58, %v203_v58  ;;  %v212_v62 = vcombine.high %v210_v59, %v210_v59  ;;  %v213_v63 = vcombine.low %v187_v56, %v189_v60  ;;  %v214_v0 = vcombine.high %v187_v56, %v189_v60  ;;  %v326_v2 = vpop.f32.mrb[4].mxu0 }
  0xf9   :  { %v2513_v3 = vpop.f32.mrb[5].mxu0 }
  0xfa   :  { %240 = vst [vmem:[#allocation2 + $0x4] sm:$0xf] %v211_v61  ;;  %242 = vst [vmem:[#allocation2 + $0xc] sm:$0xf] %v212_v62  ;;  %v221_v5 = vrot.slane %v213_v63, %v3062_v10  ;;  %v228_v6 = vrot.slane %v214_v0, %v3062_v10 }
  0xfb   :  { %2374 = vst.sshfl [vmem:[#allocation2 + $0x10] sm:$0x33 pattern:$0x76325410] %v213_v63 }
  0xfc   :  { %2375 = vst.sshfl [vmem:[#allocation2 + $0x18] sm:$0x33 pattern:$0x76325410] %v214_v0  ;;  %v229_v7 = vcombine.high %v221_v5, %v221_v5  ;;  %v230_v8 = vcombine.high %v228_v6, %v228_v6 }
  0xfd   :  { %v255_v12 = vld [vmem:[#allocation2] sm:$0x3] }
  0xfe   :  { %244 = vst [vmem:[#allocation2 + $0x14] sm:$0xf] %v229_v7  ;;  %246 = vst [vmem:[#allocation2 + $0x1c] sm:$0xf] %v230_v8  ;;  %v330_v15 = vadd.f32 %v326_v2, %v255_v12 }
 0x100   :  { %v399_v9 = vpop.f32.mrb[6].mxu0  ;;  %v2376_v19 = vmul.f32 -1.442695, %v330_v15 }
 0x101   :  { %v2524_v11 = vpop.f32.mrb[7].mxu0  ;;  %v479_v54 = vld [vmem:[#allocation2 + $0x4] sm:$0x3] }
 0x103   :  { %v554_v50 = vld [vmem:[#allocation2 + $0x1a] sm:$0x3] }
 0x105   :  { %v332_v13 = vld [vmem:[#allocation2 + $0x1e] sm:$0x3] }
 0x106   :  { %v403_v14 = vadd.f32 %v399_v9, %v332_v13 }
 0x108   :  { %2828 = vtanh.f32 %v403_v14  ;;  %v2377_v18 = vmul.f32 -1.442695, %v403_v14 }
 0x109   :  { %2830 = vtanh.f32 %v330_v15 }
 0x10a   :  { %2832 = vpow2.f32 %v2377_v18 }
 0x10b   :  { %2834 = vpow2.f32 %v2376_v19 }
 0x112   :  { %v2829_v16 = vpop.eup %2828 }
 0x113   :  { %437 = vrot.lane.b32.xlu0 %v2829_v16, %s2987_s4  ;;  %v2831_v17 = vpop.eup %2830 }
 0x114   :  { %v2833_v20 = vpop.eup %2832 }
 0x115   :  { %v414_v21 = vadd.f32 1.0, %v2833_v20  ;;  %v2835_v22 = vpop.eup %2834 }
 0x116   :  { %v407_v23 = vadd.f32 1.0, %v2835_v22 }
 0x117   :  { %420 = vrot.lane.b32.xlu0 %v2831_v17, %s2987_s4  ;;  %2836 = vrcp.f32 %v414_v21 }
 0x118   :  { %2838 = vrcp.f32 %v407_v23 }
 0x121   :  { %v2837_v24 = vpop.eup %2836 }
 0x122   :  { %v2839_v27 = vpop.eup %2838  ;;  %v435_v31 = vmul.f32 0.0, %v2837_v24 }
 0x123   :  { %v418_v34 = vmul.f32 0.0, %v2839_v27 }
 0x185   :  { %v438_v25 = vpop.permute.xlu0 %437 }
 0x186   :  { %v440_v26 = vmul.f32 %v2837_v24, %v438_v25 }
 0x188   :  { %442 = vrot.lane.b32.xlu1 %v440_v26, %s2987_s4 }
 0x189   :  { %v421_v28 = vpop.permute.xlu0 %420 }
 0x18a   :  { %v423_v29 = vmul.f32 %v2839_v27, %v421_v28 }
 0x18c   :  { %425 = vrot.lane.b32.xlu1 %v423_v29, %s2987_s4 }
 0x1fa   :  { %v443_v32 = vpop.permute.xlu1 %442 }
 0x1fb   :  { %v3156_v33 = vadd.f32 %v443_v32, %v435_v31  ;;  %v703_v32 = vld [vmem:[#allocation2 + $0x8] sm:$0x3] }
 0x1fd   :  { %2840 = vtanh.f32 %v3156_v33 }
 0x1fe   :  { %v426_v35 = vpop.permute.xlu1 %425 }
 0x1ff   :  { %v3159_v36 = vadd.f32 %v426_v35, %v418_v34 }
 0x201   :  { %2842 = vtanh.f32 %v3159_v36 }
 0x207   :  { %v2841_v38 = vpop.eup %2840 }
 0x208   :  { %448 = vrot.lane.b32.xlu0 %v2841_v38, %s2987_s4 }
 0x20b   :  { %v2843_v39 = vpop.eup %2842 }
 0x20c   :  { %431 = vrot.lane.b32.xlu1 %v2843_v39, %s2987_s4 }
 0x27a   :  { %v449_v41 = vpop.permute.xlu0 %448 }
 0x27b   :  { %v451_v42 = vmul.f32 %v2837_v24, %v449_v41 }
 0x27d   :  { %v472_v44 = vrot.slane %v451_v42, %v3062_v10 }
 0x27e   :  { %v432_v45 = vpop.permute.xlu1 %431 }
 0x27f   :  { %v434_v46 = vmul.f32 %v2839_v27, %v432_v45  ;;  %473 = vrot.lane.b32.xlu0 %v472_v44, %s2988_s26  ;;  %v778_v27 = vld [vmem:[#allocation2 + $0x16] sm:$0x3] }
 0x281   :  { %v459_v47 = vrot.slane %v434_v46, %v3062_v10 }
 0x283   :  { %460 = vrot.lane.b32.xlu1 %v459_v47, %s2988_s26 }
 0x2f1   :  { %v474_v48 = vpop.permute.xlu0 %473 }
 0x2f2   :  { %477 = vst.msk [vmem:[#allocation4 + $0xe] sm:$0x3] %vm463_vm2, %v474_v48  ;;  %2545 = vmatmul.mubr.msk.f32.vlgmr.msra.gmra.mrb[8].mxu0 %vm256_vm3, %v474_v48 }
 0x2f3   :  { %2737 = vmatpush3.bf16.msra.mxu0 %v3124_v40  ;;  %2566 = vmatprep.mubr.msk.f32.mxu0 %vm2986_vm0, %v2983_v1 }
 0x2f4   :  { %2738 = vmatprep.subr.bf16.mxu0 %v2985_v4 }
 0x2f5   :  { %v461_v49 = vpop.permute.xlu1 %460 }
 0x2f6   :  { %464 = vst.msk [vmem:[#allocation3] sm:$0x3] %vm463_vm2, %v461_v49  ;;  %2534 = vmatmul.mubr.msk.f32.vlgmr.msra.gmra.mrb[0].mxu1 %vm256_vm3, %v461_v49 }
 0x2f7   :  { %2731 = vmatpush3.bf16.msra.mxu1 %v3100_v30  ;;  %2740 = vmatpush3.bf16.msra.mxu0 %v3129_v43 }
 0x2f8   :  { %2732 = vmatprep.subr.bf16.mxu1 %v2985_v4  ;;  %2555 = vmatprep.mubr.msk.f32.mxu1 %vm2986_vm0, %v2983_v1 }
 0x2f9   :  { %2747 = vmatprep.subr.bf16.mxu0 %v2985_v4 }
 0x2fb   :  { %2734 = vmatpush3.bf16.msra.mxu1 %v3113_v37 }
 0x2fc   :  { %2741 = vmatprep.subr.bf16.mxu1 %v2985_v4 }
 0x3c5   :  { %v623_v51 = vpop.f32.mrb[8].mxu0 }
 0x3c6   :  { %v627_v52 = vadd.f32 %v623_v51, %v554_v50  ;;  %v2546_v53 = vpop.f32.mrb[9].mxu0 }
 0x3c8   :  { %2844 = vtanh.f32 %v627_v52  ;;  %v2381_v60 = vmul.f32 -1.442695, %v627_v52 }
 0x3c9   :  { %v548_v55 = vpop.f32.mrb[0].mxu1 }
 0x3ca   :  { %v552_v56 = vadd.f32 %v548_v55, %v479_v54  ;;  %v2535_v57 = vpop.f32.mrb[1].mxu1 }
 0x3cc   :  { %2846 = vtanh.f32 %v552_v56  ;;  %v2380_v61 = vmul.f32 -1.442695, %v552_v56 }
 0x3cd   :  { %2848 = vpow2.f32 %v2381_v60 }
 0x3ce   :  { %2850 = vpow2.f32 %v2380_v61 }
 0x3d2   :  { %v2845_v58 = vpop.eup %2844 }
 0x3d3   :  { %661 = vrot.lane.b32.xlu0 %v2845_v58, %s2987_s4 }
 0x3d6   :  { %v2847_v59 = vpop.eup %2846 }
 0x3d7   :  { %644 = vrot.lane.b32.xlu1 %v2847_v59, %s2987_s4  ;;  %v2849_v62 = vpop.eup %2848 }
 0x3d8   :  { %v638_v63 = vadd.f32 1.0, %v2849_v62  ;;  %v2851_v0 = vpop.eup %2850 }
 0x3d9   :  { %v631_v2 = vadd.f32 1.0, %v2851_v0 }
 0x3da   :  { %2852 = vrcp.f32 %v638_v63 }
 0x3db   :  { %2854 = vrcp.f32 %v631_v2 }
 0x3e4   :  { %v2853_v3 = vpop.eup %2852 }
 0x3e5   :  { %v2855_v7 = vpop.eup %2854  ;;  %v659_v11 = vmul.f32 %v2853_v3, %v3156_v33 }
 0x3e6   :  { %v642_v14 = vmul.f32 %v2855_v7, %v3159_v36 }
 0x445   :  { %v662_v5 = vpop.permute.xlu0 %661 }
 0x446   :  { %v664_v6 = vmul.f32 %v2853_v3, %v662_v5 }
 0x448   :  { %666 = vrot.lane.b32.xlu0 %v664_v6, %s2987_s4 }
 0x449   :  { %v645_v8 = vpop.permute.xlu1 %644 }
 0x44a   :  { %v647_v9 = vmul.f32 %v2855_v7, %v645_v8 }
 0x44c   :  { %649 = vrot.lane.b32.xlu1 %v647_v9, %s2987_s4 }
 0x4ba   :  { %v667_v12 = vpop.permute.xlu0 %666 }
 0x4bb   :  { %v3189_v13 = vadd.f32 %v667_v12, %v659_v11  ;;  %v927_v12 = vld [vmem:[#allocation2 + $0xc] sm:$0x3] }
 0x4bd   :  { %2856 = vtanh.f32 %v3189_v13 }
 0x4be   :  { %v650_v15 = vpop.permute.xlu1 %649 }
 0x4bf   :  { %v3193_v16 = vadd.f32 %v650_v15, %v642_v14 }
 0x4c1   :  { %2858 = vtanh.f32 %v3193_v16 }
 0x4c7   :  { %v2857_v17 = vpop.eup %2856 }
 0x4c8   :  { %672 = vrot.lane.b32.xlu0 %v2857_v17, %s2987_s4 }
 0x4cb   :  { %v2859_v18 = vpop.eup %2858 }
 0x4cc   :  { %655 = vrot.lane.b32.xlu1 %v2859_v18, %s2987_s4 }
 0x53a   :  { %v673_v19 = vpop.permute.xlu0 %672 }
 0x53b   :  { %v675_v20 = vmul.f32 %v2853_v3, %v673_v19 }
 0x53d   :  { %v696_v21 = vrot.slane %v675_v20, %v3062_v10 }
 0x53e   :  { %v656_v22 = vpop.permute.xlu1 %655 }
 0x53f   :  { %v658_v23 = vmul.f32 %v2855_v7, %v656_v22  ;;  %697 = vrot.lane.b32.xlu0 %v696_v21, %s2988_s26  ;;  %v1002_v7 = vld [vmem:[#allocation2 + $0x12] sm:$0x3] }
 0x541   :  { %v683_v24 = vrot.slane %v658_v23, %v3062_v10 }
 0x543   :  { %684 = vrot.lane.b32.xlu1 %v683_v24, %s2988_s26 }
 0x5b1   :  { %v698_v25 = vpop.permute.xlu0 %697 }
 0x5b2   :  { %701 = vst.msk [vmem:[#allocation4 + $0xc] sm:$0x3] %vm463_vm2, %v698_v25  ;;  %2567 = vmatmul.mubr.msk.f32.vlgmr.msra.gmra.mrb[10].mxu0 %vm256_vm3, %v698_v25 }
 0x5b3   :  { %2749 = vmatpush3.bf16.msra.mxu0 %v3124_v40  ;;  %2588 = vmatprep.mubr.msk.f32.mxu0 %vm2986_vm0, %v2983_v1 }
 0x5b4   :  { %2750 = vmatprep.subr.bf16.mxu0 %v2985_v4 }
 0x5b5   :  { %v685_v26 = vpop.permute.xlu1 %684 }
 0x5b6   :  { %688 = vst.msk [vmem:[#allocation3 + $0x2] sm:$0x3] %vm463_vm2, %v685_v26  ;;  %2556 = vmatmul.mubr.msk.f32.vlgmr.msra.gmra.mrb[2].mxu1 %vm256_vm3, %v685_v26 }
 0x5b7   :  { %2743 = vmatpush3.bf16.msra.mxu1 %v3100_v30  ;;  %2752 = vmatpush3.bf16.msra.mxu0 %v3129_v43 }
 0x5b8   :  { %2744 = vmatprep.subr.bf16.mxu1 %v2985_v4  ;;  %2577 = vmatprep.mubr.msk.f32.mxu1 %vm2986_vm0, %v2983_v1 }
 0x5b9   :  { %2759 = vmatprep.subr.bf16.mxu0 %v2985_v4 }
 0x5bb   :  { %2746 = vmatpush3.bf16.msra.mxu1 %v3113_v37 }
 0x5bc   :  { %2753 = vmatprep.subr.bf16.mxu1 %v2985_v4 }
 0x685   :  { %v847_v28 = vpop.f32.mrb[10].mxu0 }
 0x686   :  { %v851_v29 = vadd.f32 %v847_v28, %v778_v27  ;;  %v2568_v31 = vpop.f32.mrb[11].mxu0 }
 0x688   :  { %2860 = vtanh.f32 %v851_v29  ;;  %v2385_v39 = vmul.f32 -1.442695, %v851_v29 }
 0x689   :  { %v772_v33 = vpop.f32.mrb[2].mxu1 }
 0x68a   :  { %v776_v34 = vadd.f32 %v772_v33, %v703_v32  ;;  %v2557_v35 = vpop.f32.mrb[3].mxu1 }
 0x68c   :  { %2862 = vtanh.f32 %v776_v34  ;;  %v2384_v41 = vmul.f32 -1.442695, %v776_v34 }
 0x68d   :  { %2864 = vpow2.f32 %v2385_v39 }
 0x68e   :  { %2866 = vpow2.f32 %v2384_v41 }
 0x692   :  { %v2861_v36 = vpop.eup %2860 }
 0x693   :  { %885 = vrot.lane.b32.xlu0 %v2861_v36, %s2987_s4 }
 0x696   :  { %v2863_v38 = vpop.eup %2862 }
 0x697   :  { %868 = vrot.lane.b32.xlu1 %v2863_v38, %s2987_s4  ;;  %v2865_v42 = vpop.eup %2864 }
 0x698   :  { %v862_v44 = vadd.f32 1.0, %v2865_v42  ;;  %v2867_v45 = vpop.eup %2866 }
 0x699   :  { %v855_v46 = vadd.f32 1.0, %v2867_v45 }
 0x69a   :  { %2868 = vrcp.f32 %v862_v44 }
 0x69b   :  { %2870 = vrcp.f32 %v855_v46 }
 0x6a4   :  { %v2869_v47 = vpop.eup %2868 }
 0x6a5   :  { %v2871_v50 = vpop.eup %2870  ;;  %v883_v53 = vmul.f32 %v2869_v47, %v3189_v13 }
 0x6a6   :  { %v866_v56 = vmul.f32 %v2871_v50, %v3193_v16 }
 0x705   :  { %v886_v48 = vpop.permute.xlu0 %885 }
 0x706   :  { %v888_v49 = vmul.f32 %v2869_v47, %v886_v48 }
 0x708   :  { %890 = vrot.lane.b32.xlu0 %v888_v49, %s2987_s4 }
 0x709   :  { %v869_v51 = vpop.permute.xlu1 %868 }
 0x70a   :  { %v871_v52 = vmul.f32 %v2871_v50, %v869_v51 }
 0x70c   :  { %873 = vrot.lane.b32.xlu1 %v871_v52, %s2987_s4 }
 0x77a   :  { %v891_v54 = vpop.permute.xlu0 %890 }
 0x77b   :  { %v3223_v55 = vadd.f32 %v891_v54, %v883_v53  ;;  %v1150_v54 = vld [vmem:[#allocation2 + $0x10] sm:$0x3] }
 0x77d   :  { %2872 = vtanh.f32 %v3223_v55 }
 0x77e   :  { %v874_v57 = vpop.permute.xlu1 %873 }
 0x77f   :  { %v3227_v58 = vadd.f32 %v874_v57, %v866_v56 }
 0x781   :  { %2874 = vtanh.f32 %v3227_v58 }
 0x787   :  { %v2873_v59 = vpop.eup %2872 }
 0x788   :  { %896 = vrot.lane.b32.xlu0 %v2873_v59, %s2987_s4 }
 0x78b   :  { %v2875_v60 = vpop.eup %2874 }
 0x78c   :  { %879 = vrot.lane.b32.xlu1 %v2875_v60, %s2987_s4 }
 0x7fa   :  { %v897_v61 = vpop.permute.xlu0 %896 }
 0x7fb   :  { %v899_v62 = vmul.f32 %v2869_v47, %v897_v61 }
 0x7fd   :  { %v920_v63 = vrot.slane %v899_v62, %v3062_v10 }
 0x7fe   :  { %v880_v0 = vpop.permute.xlu1 %879 }
 0x7ff   :  { %v882_v2 = vmul.f32 %v2871_v50, %v880_v0  ;;  %921 = vrot.lane.b32.xlu0 %v920_v63, %s2988_s26  ;;  %v1224_v50 = vld [vmem:[#allocation2 + $0xe] sm:$0x3] }
 0x801   :  { %v907_v3 = vrot.slane %v882_v2, %v3062_v10 }
 0x803   :  { %908 = vrot.lane.b32.xlu1 %v907_v3, %s2988_s26 }
 0x871   :  { %v922_v5 = vpop.permute.xlu0 %921 }
 0x872   :  { %925 = vst.msk [vmem:[#allocation4 + $0xa] sm:$0x3] %vm463_vm2, %v922_v5  ;;  %2589 = vmatmul.mubr.msk.f32.vlgmr.msra.gmra.mrb[12].mxu0 %vm256_vm3, %v922_v5 }
 0x873   :  { %2761 = vmatpush3.bf16.msra.mxu0 %v3124_v40  ;;  %2610 = vmatprep.mubr.msk.f32.mxu0 %vm2986_vm0, %v2983_v1 }
 0x874   :  { %2762 = vmatprep.subr.bf16.mxu0 %v2985_v4 }
 0x875   :  { %v909_v6 = vpop.permute.xlu1 %908 }
 0x876   :  { %912 = vst.msk [vmem:[#allocation3 + $0x4] sm:$0x3] %vm463_vm2, %v909_v6  ;;  %2578 = vmatmul.mubr.msk.f32.vlgmr.msra.gmra.mrb[4].mxu1 %vm256_vm3, %v909_v6 }
 0x877   :  { %2755 = vmatpush3.bf16.msra.mxu1 %v3100_v30  ;;  %2764 = vmatpush3.bf16.msra.mxu0 %v3129_v43 }
 0x878   :  { %2756 = vmatprep.subr.bf16.mxu1 %v2985_v4  ;;  %2599 = vmatprep.mubr.msk.f32.mxu1 %vm2986_vm0, %v2983_v1 }
 0x879   :  { %2771 = vmatprep.subr.bf16.mxu0 %v2985_v4 }
 0x87b   :  { %2758 = vmatpush3.bf16.msra.mxu1 %v3113_v37 }
 0x87c   :  { %2765 = vmatprep.subr.bf16.mxu1 %v2985_v4 }
 0x945   :  { %v1071_v8 = vpop.f32.mrb[12].mxu0 }
 0x946   :  { %v1075_v9 = vadd.f32 %v1071_v8, %v1002_v7  ;;  %v2590_v11 = vpop.f32.mrb[13].mxu0 }
 0x948   :  { %2876 = vtanh.f32 %v1075_v9  ;;  %v2389_v18 = vmul.f32 -1.442695, %v1075_v9 }
 0x949   :  { %v996_v13 = vpop.f32.mrb[4].mxu1 }
 0x94a   :  { %v1000_v14 = vadd.f32 %v996_v13, %v927_v12  ;;  %v2579_v15 = vpop.f32.mrb[5].mxu1 }
 0x94c   :  { %2878 = vtanh.f32 %v1000_v14  ;;  %v2388_v19 = vmul.f32 -1.442695, %v1000_v14 }
 0x94d   :  { %2880 = vpow2.f32 %v2389_v18 }
 0x94e   :  { %2882 = vpow2.f32 %v2388_v19 }
 0x952   :  { %v2877_v16 = vpop.eup %2876 }
 0x953   :  { %1109 = vrot.lane.b32.xlu0 %v2877_v16, %s2987_s4 }
 0x956   :  { %v2879_v17 = vpop.eup %2878 }
 0x957   :  { %1092 = vrot.lane.b32.xlu1 %v2879_v17, %s2987_s4  ;;  %v2881_v20 = vpop.eup %2880 }
 0x958   :  { %v1086_v21 = vadd.f32 1.0, %v2881_v20  ;;  %v2883_v22 = vpop.eup %2882 }
 0x959   :  { %v1079_v23 = vadd.f32 1.0, %v2883_v22 }
 0x95a   :  { %2884 = vrcp.f32 %v1086_v21 }
 0x95b   :  { %2886 = vrcp.f32 %v1079_v23 }
 0x964   :  { %v2885_v24 = vpop.eup %2884 }
 0x965   :  { %v2887_v27 = vpop.eup %2886  ;;  %v1107_v31 = vmul.f32 %v2885_v24, %v3223_v55 }
 0x966   :  { %v1090_v34 = vmul.f32 %v2887_v27, %v3227_v58 }
 0x9c5   :  { %v1110_v25 = vpop.permute.xlu0 %1109 }
 0x9c6   :  { %v1112_v26 = vmul.f32 %v2885_v24, %v1110_v25 }
 0x9c8   :  { %1114 = vrot.lane.b32.xlu0 %v1112_v26, %s2987_s4 }
 0x9c9   :  { %v1093_v28 = vpop.permute.xlu1 %1092 }
 0x9ca   :  { %v1095_v29 = vmul.f32 %v2887_v27, %v1093_v28 }
 0x9cc   :  { %1097 = vrot.lane.b32.xlu1 %v1095_v29, %s2987_s4 }
 0xa3a   :  { %v1115_v32 = vpop.permute.xlu0 %1114 }
 0xa3b   :  { %v3257_v33 = vadd.f32 %v1115_v32, %v1107_v31  ;;  %v1372_v32 = vld [vmem:[#allocation2 + $0x14] sm:$0x3] }
 0xa3d   :  { %2888 = vtanh.f32 %v3257_v33 }
 0xa3e   :  { %v1098_v35 = vpop.permute.xlu1 %1097 }
 0xa3f   :  { %v3261_v36 = vadd.f32 %v1098_v35, %v1090_v34 }
 0xa41   :  { %2890 = vtanh.f32 %v3261_v36 }
 0xa47   :  { %v2889_v38 = vpop.eup %2888 }
 0xa48   :  { %1120 = vrot.lane.b32.xlu0 %v2889_v38, %s2987_s4 }
 0xa4b   :  { %v2891_v39 = vpop.eup %2890 }
 0xa4c   :  { %1103 = vrot.lane.b32.xlu1 %v2891_v39, %s2987_s4 }
 0xaba   :  { %v1121_v41 = vpop.permute.xlu0 %1120 }
 0xabb   :  { %v1123_v42 = vmul.f32 %v2885_v24, %v1121_v41 }
 0xabd   :  { %v1144_v44 = vrot.slane %v1123_v42, %v3062_v10 }
 0xabe   :  { %v1104_v45 = vpop.permute.xlu1 %1103 }
 0xabf   :  { %v1106_v46 = vmul.f32 %v2887_v27, %v1104_v45  ;;  %1145 = vrot.lane.b32.xlu0 %v1144_v44, %s2988_s26  ;;  %v1446_v27 = vld [vmem:[#allocation2 + $0xa] sm:$0x3] }
 0xac1   :  { %v1131_v47 = vrot.slane %v1106_v46, %v3062_v10 }
 0xac3   :  { %1132 = vrot.lane.b32.xlu1 %v1131_v47, %s2988_s26 }
 0xb31   :  { %v1146_v48 = vpop.permute.xlu0 %1145 }
 0xb32   :  { %1149 = vst.msk [vmem:[#allocation4 + $0x8] sm:$0x3] %vm463_vm2, %v1146_v48  ;;  %2611 = vmatmul.mubr.msk.f32.vlgmr.msra.gmra.mrb[14].mxu0 %vm256_vm3, %v1146_v48 }
 0xb33   :  { %2773 = vmatpush3.bf16.msra.mxu0 %v3124_v40  ;;  %2632 = vmatprep.mubr.msk.f32.mxu0 %vm2986_vm0, %v2983_v1 }
 0xb34   :  { %2774 = vmatprep.subr.bf16.mxu0 %v2985_v4 }
 0xb35   :  { %v1133_v49 = vpop.permute.xlu1 %1132 }
 0xb36   :  { %1136 = vst.msk [vmem:[#allocation3 + $0x6] sm:$0x3] %vm463_vm2, %v1133_v49  ;;  %2600 = vmatmul.mubr.msk.f32.vlgmr.msra.gmra.mrb[6].mxu1 %vm256_vm3, %v1133_v49 }
 0xb37   :  { %2767 = vmatpush3.bf16.msra.mxu1 %v3100_v30  ;;  %2776 = vmatpush3.bf16.msra.mxu0 %v3129_v43 }
 0xb38   :  { %2768 = vmatprep.subr.bf16.mxu1 %v2985_v4  ;;  %2621 = vmatprep.mubr.msk.f32.mxu1 %vm2986_vm0, %v2983_v1 }
 0xb39   :  { %2783 = vmatprep.subr.bf16.mxu0 %v2985_v4 }
 0xb3b   :  { %2770 = vmatpush3.bf16.msra.mxu1 %v3113_v37 }
 0xb3c   :  { %2777 = vmatprep.subr.bf16.mxu1 %v2985_v4 }
 0xc05   :  { %v1293_v51 = vpop.f32.mrb[14].mxu0 }
 0xc06   :  { %v1297_v52 = vadd.f32 %v1293_v51, %v1224_v50  ;;  %v2612_v53 = vpop.f32.mrb[15].mxu0 }
 0xc08   :  { %2892 = vtanh.f32 %v1297_v52  ;;  %v2393_v60 = vmul.f32 -1.442695, %v1297_v52 }
 0xc09   :  { %v1219_v55 = vpop.f32.mrb[6].mxu1 }
 0xc0a   :  { %v1223_v56 = vadd.f32 %v1219_v55, %v1150_v54  ;;  %v2601_v57 = vpop.f32.mrb[7].mxu1 }
 0xc0c   :  { %2894 = vtanh.f32 %v1223_v56  ;;  %v2392_v61 = vmul.f32 -1.442695, %v1223_v56 }
 0xc0d   :  { %2896 = vpow2.f32 %v2393_v60 }
 0xc0e   :  { %2898 = vpow2.f32 %v2392_v61 }
 0xc12   :  { %v2893_v58 = vpop.eup %2892 }
 0xc13   :  { %1331 = vrot.lane.b32.xlu0 %v2893_v58, %s2987_s4 }
 0xc16   :  { %v2895_v59 = vpop.eup %2894 }
 0xc17   :  { %1314 = vrot.lane.b32.xlu1 %v2895_v59, %s2987_s4  ;;  %v2897_v62 = vpop.eup %2896 }
 0xc18   :  { %v1308_v63 = vadd.f32 1.0, %v2897_v62  ;;  %v2899_v0 = vpop.eup %2898 }
 0xc19   :  { %v1301_v2 = vadd.f32 1.0, %v2899_v0 }
 0xc1a   :  { %2900 = vrcp.f32 %v1308_v63 }
 0xc1b   :  { %2902 = vrcp.f32 %v1301_v2 }
 0xc24   :  { %v2901_v3 = vpop.eup %2900 }
 0xc25   :  { %v2903_v7 = vpop.eup %2902  ;;  %v1329_v11 = vmul.f32 %v2901_v3, %v3257_v33 }
 0xc26   :  { %v1312_v14 = vmul.f32 %v2903_v7, %v3261_v36 }
 0xc85   :  { %v1332_v5 = vpop.permute.xlu0 %1331 }
 0xc86   :  { %v1334_v6 = vmul.f32 %v2901_v3, %v1332_v5 }
 0xc88   :  { %1336 = vrot.lane.b32.xlu0 %v1334_v6, %s2987_s4 }
 0xc89   :  { %v1315_v8 = vpop.permute.xlu1 %1314 }
 0xc8a   :  { %v1317_v9 = vmul.f32 %v2903_v7, %v1315_v8 }
 0xc8c   :  { %1319 = vrot.lane.b32.xlu1 %v1317_v9, %s2987_s4 }
 0xcfa   :  { %v1337_v12 = vpop.permute.xlu0 %1336 }
 0xcfb   :  { %v3291_v13 = vadd.f32 %v1337_v12, %v1329_v11  ;;  %v1594_v11 = vld [vmem:[#allocation2 + $0x18] sm:$0x3] }
 0xcfd   :  { %2904 = vtanh.f32 %v3291_v13 }
 0xcfe   :  { %v1320_v15 = vpop.permute.xlu1 %1319 }
 0xcff   :  { %v3295_v16 = vadd.f32 %v1320_v15, %v1312_v14 }
 0xd01   :  { %2906 = vtanh.f32 %v3295_v16 }
 0xd07   :  { %v2905_v17 = vpop.eup %2904 }
 0xd08   :  { %1342 = vrot.lane.b32.xlu0 %v2905_v17, %s2987_s4 }
 0xd0b   :  { %v2907_v18 = vpop.eup %2906 }
 0xd0c   :  { %1325 = vrot.lane.b32.xlu1 %v2907_v18, %s2987_s4 }
 0xd7a   :  { %v1343_v19 = vpop.permute.xlu0 %1342 }
 0xd7b   :  { %v1345_v20 = vmul.f32 %v2901_v3, %v1343_v19 }
 0xd7d   :  { %v1366_v21 = vrot.slane %v1345_v20, %v3062_v10 }
 0xd7e   :  { %v1326_v22 = vpop.permute.xlu1 %1325 }
 0xd7f   :  { %v1328_v23 = vmul.f32 %v2903_v7, %v1326_v22  ;;  %1367 = vrot.lane.b32.xlu0 %v1366_v21, %s2988_s26 }
 0xd81   :  { %v1353_v24 = vrot.slane %v1328_v23, %v3062_v10 }
 0xd83   :  { %1354 = vrot.lane.b32.xlu1 %v1353_v24, %s2988_s26 }
 0xdf1   :  { %v1368_v25 = vpop.permute.xlu0 %1367 }
 0xdf2   :  { %1371 = vst.msk [vmem:[#allocation4 + $0x6] sm:$0x3] %vm463_vm2, %v1368_v25  ;;  %2633 = vmatmul.mubr.msk.f32.vlgmr.msra.gmra.mrb[16].mxu0 %vm256_vm3, %v1368_v25 }
 0xdf3   :  { %2785 = vmatpush3.bf16.msra.mxu0 %v3124_v40  ;;  %2654 = vmatprep.mubr.msk.f32.mxu0 %vm2986_vm0, %v2983_v1 }
 0xdf4   :  { %2786 = vmatprep.subr.bf16.mxu0 %v2985_v4 }
 0xdf5   :  { %v1355_v26 = vpop.permute.xlu1 %1354 }
 0xdf6   :  { %1358 = vst.msk [vmem:[#allocation3 + $0x8] sm:$0x3] %vm463_vm2, %v1355_v26  ;;  %2622 = vmatmul.mubr.msk.f32.vlgmr.msra.gmra.mrb[8].mxu1 %vm256_vm3, %v1355_v26 }
 0xdf7   :  { %2779 = vmatpush3.bf16.msra.mxu1 %v3100_v30  ;;  %2788 = vmatpush3.bf16.msra.mxu0 %v3129_v43 }
 0xdf8   :  { %2780 = vmatprep.subr.bf16.mxu1 %v2985_v4  ;;  %2643 = vmatprep.mubr.msk.f32.mxu1 %vm2986_vm0, %v2983_v1 }
 0xdf9   :  { %2795 = vmatprep.subr.bf16.mxu0 %v2985_v4 }
 0xdfb   :  { %2782 = vmatpush3.bf16.msra.mxu1 %v3113_v37 }
 0xdfc   :  { %2789 = vmatprep.subr.bf16.mxu1 %v2985_v4 }
 0xec5   :  { %v1515_v28 = vpop.f32.mrb[16].mxu0 }
 0xec6   :  { %v1519_v29 = vadd.f32 %v1515_v28, %v1446_v27  ;;  %v2634_v31 = vpop.f32.mrb[17].mxu0 }
 0xec8   :  { %2908 = vtanh.f32 %v1519_v29  ;;  %v2397_v39 = vmul.f32 -1.442695, %v1519_v29 }
 0xec9   :  { %v1441_v33 = vpop.f32.mrb[8].mxu1 }
 0xeca   :  { %v1445_v34 = vadd.f32 %v1441_v33, %v1372_v32  ;;  %v2623_v35 = vpop.f32.mrb[9].mxu1 }
 0xecc   :  { %2910 = vtanh.f32 %v1445_v34  ;;  %v2396_v41 = vmul.f32 -1.442695, %v1445_v34 }
 0xecd   :  { %2912 = vpow2.f32 %v2397_v39 }
 0xece   :  { %2914 = vpow2.f32 %v2396_v41 }
 0xed2   :  { %v2909_v36 = vpop.eup %2908 }
 0xed3   :  { %1553 = vrot.lane.b32.xlu0 %v2909_v36, %s2987_s4 }
 0xed6   :  { %v2911_v38 = vpop.eup %2910 }
 0xed7   :  { %1536 = vrot.lane.b32.xlu1 %v2911_v38, %s2987_s4  ;;  %v2913_v42 = vpop.eup %2912 }
 0xed8   :  { %v1530_v44 = vadd.f32 1.0, %v2913_v42  ;;  %v2915_v45 = vpop.eup %2914 }
 0xed9   :  { %v1523_v46 = vadd.f32 1.0, %v2915_v45 }
 0xeda   :  { %2916 = vrcp.f32 %v1530_v44  ;;  %v1890_v44 = vld [vmem:[#allocation2 + $0x2] sm:$0x3] }
 0xedb   :  { %2918 = vrcp.f32 %v1523_v46 }
 0xee4   :  { %v2917_v47 = vpop.eup %2916 }
 0xee5   :  { %v2919_v50 = vpop.eup %2918  ;;  %v1551_v53 = vmul.f32 %v2917_v47, %v3291_v13 }
 0xee6   :  { %v1534_v56 = vmul.f32 %v2919_v50, %v3295_v16 }
 0xf45   :  { %v1554_v48 = vpop.permute.xlu0 %1553 }
 0xf46   :  { %v1556_v49 = vmul.f32 %v2917_v47, %v1554_v48  ;;  %v1816_v48 = vld [vmem:[#allocation2 + $0x1c] sm:$0x3] }
 0xf48   :  { %1558 = vrot.lane.b32.xlu0 %v1556_v49, %s2987_s4 }
 0xf49   :  { %v1537_v51 = vpop.permute.xlu1 %1536 }
 0xf4a   :  { %v1539_v52 = vmul.f32 %v2919_v50, %v1537_v51 }
 0xf4c   :  { %1541 = vrot.lane.b32.xlu1 %v1539_v52, %s2987_s4 }
 0xfba   :  { %v1559_v54 = vpop.permute.xlu0 %1558 }
 0xfbb   :  { %v3325_v55 = vadd.f32 %v1559_v54, %v1551_v53 }
 0xfbd   :  { %2920 = vtanh.f32 %v3325_v55 }
 0xfbe   :  { %v1542_v57 = vpop.permute.xlu1 %1541 }
 0xfbf   :  { %v3329_v58 = vadd.f32 %v1542_v57, %v1534_v56 }
 0xfc1   :  { %2922 = vtanh.f32 %v3329_v58 }
 0xfc7   :  { %v2921_v59 = vpop.eup %2920 }
 0xfc8   :  { %1564 = vrot.lane.b32.xlu0 %v2921_v59, %s2987_s4 }
 0xfcb   :  { %v2923_v60 = vpop.eup %2922 }
 0xfcc   :  { %1547 = vrot.lane.b32.xlu1 %v2923_v60, %s2987_s4 }
0x103a   :  { %v1565_v61 = vpop.permute.xlu0 %1564 }
0x103b   :  { %v1567_v62 = vmul.f32 %v2917_v47, %v1565_v61 }
0x103d   :  { %v1588_v63 = vrot.slane %v1567_v62, %v3062_v10 }
0x103e   :  { %v1548_v0 = vpop.permute.xlu1 %1547 }
0x103f   :  { %v1550_v2 = vmul.f32 %v2919_v50, %v1548_v0  ;;  %1589 = vrot.lane.b32.xlu0 %v1588_v63, %s2988_s26 }
0x1041   :  { %v1575_v3 = vrot.slane %v1550_v2, %v3062_v10 }
0x1043   :  { %1576 = vrot.lane.b32.xlu1 %v1575_v3, %s2988_s26 }
0x10b1   :  { %v1590_v5 = vpop.permute.xlu0 %1589 }
0x10b2   :  { %1593 = vst.msk [vmem:[#allocation4 + $0x4] sm:$0x3] %vm463_vm2, %v1590_v5  ;;  %2655 = vmatmul.mubr.msk.f32.vlgmr.msra.gmra.mrb[18].mxu0 %vm256_vm3, %v1590_v5 }
0x10b3   :  { %2797 = vmatpush3.bf16.msra.mxu0 %v3124_v40  ;;  %2676 = vmatprep.mubr.msk.f32.mxu0 %vm2986_vm0, %v2983_v1  ;;  %v1668_v40 = vld [vmem:[#allocation2 + $0x6] sm:$0x3] }
0x10b4   :  { %2798 = vmatprep.subr.bf16.mxu0 %v2985_v4 }
0x10b5   :  { %v1577_v6 = vpop.permute.xlu1 %1576 }
0x10b6   :  { %1580 = vst.msk [vmem:[#allocation3 + $0xa] sm:$0x3] %vm463_vm2, %v1577_v6  ;;  %2644 = vmatmul.mubr.msk.f32.vlgmr.msra.gmra.mrb[10].mxu1 %vm256_vm3, %v1577_v6 }
0x10b7   :  { %2791 = vmatpush3.bf16.msra.mxu1 %v3100_v30  ;;  %2800 = vmatpush3.bf16.msra.mxu0 %v3129_v43 }
0x10b8   :  { %2792 = vmatprep.subr.bf16.mxu1 %v2985_v4  ;;  %2665 = vmatprep.mubr.msk.f32.mxu1 %vm2986_vm0, %v2983_v1 }
0x10bb   :  { %2794 = vmatpush3.bf16.msra.mxu1 %v3113_v37 }
0x1185   :  { %v1737_v7 = vpop.f32.mrb[18].mxu0 }
0x1186   :  { %v1741_v8 = vadd.f32 %v1737_v7, %v1668_v40  ;;  %v2656_v9 = vpop.f32.mrb[19].mxu0 }
0x1188   :  { %2924 = vtanh.f32 %v1741_v8  ;;  %v2401_v4 = vmul.f32 -1.442695, %v1741_v8 }
0x1189   :  { %v1663_v12 = vpop.f32.mrb[10].mxu1 }
0x118a   :  { %v1667_v13 = vadd.f32 %v1663_v12, %v1594_v11  ;;  %v2645_v14 = vpop.f32.mrb[11].mxu1  ;;  %v2057_v12 = vld [vmem:[%s3461_s6] sm:$0xff] }
0x118b   :  { %v2059_v14 = vld [vmem:[%s3461_s6 + $0x10] sm:$0xff] }
0x118c   :  { %2926 = vtanh.f32 %v1667_v13  ;;  %v2400_v1 = vmul.f32 -1.442695, %v1667_v13  ;;  %v2058_v13 = vld [vmem:[%s3461_s6 + $0x8] sm:$0xff] }
0x118d   :  { %2928 = vpow2.f32 %v2401_v4 }
0x118e   :  { %2930 = vpow2.f32 %v2400_v1 }
0x1192   :  { %v2925_v30 = vpop.eup %2924 }
0x1193   :  { %1775 = vrot.lane.b32.xlu0 %v2925_v30, %s2987_s4  ;;  %v2801_v30 = vpack.c.bf16 %v2058_v13, %v2057_v12 }
0x1195   :  { %2802 = vmatprep.subr.bf16.mxu1 %v2801_v30 }
0x1196   :  { %v2927_v43 = vpop.eup %2926 }
0x1197   :  { %1758 = vrot.lane.b32.xlu1 %v2927_v43, %s2987_s4  ;;  %v2929_v37 = vpop.eup %2928  ;;  %v2060_v43 = vld [vmem:[%s3461_s6 + $0x18] sm:$0xff] }
0x1198   :  { %v1752_v15 = vadd.f32 1.0, %v2929_v37  ;;  %v2931_v16 = vpop.eup %2930  ;;  %v2805_v4 = vpack.c.bf16 %v2060_v43, %v2059_v14 }
0x1199   :  { %v1745_v17 = vadd.f32 1.0, %v2931_v16 }
0x119a   :  { %2932 = vrcp.f32 %v1752_v15 }
0x119b   :  { %2934 = vrcp.f32 %v1745_v17 }
0x11a4   :  { %v2933_v18 = vpop.eup %2932 }
0x11a5   :  { %v2935_v21 = vpop.eup %2934  ;;  %v1773_v24 = vmul.f32 %v2933_v18, %v3325_v55 }
0x11a6   :  { %v1756_v27 = vmul.f32 %v2935_v21, %v3329_v58 }
0x1205   :  { %v1776_v19 = vpop.permute.xlu0 %1775 }
0x1206   :  { %v1778_v20 = vmul.f32 %v2933_v18, %v1776_v19  ;;  %v2046_v19 = vld [vmem:[%s3460_s5 + $0x8] sm:$0xff] }
0x1208   :  { %1780 = vrot.lane.b32.xlu0 %v1778_v20, %s2987_s4 }
0x1209   :  { %v1759_v22 = vpop.permute.xlu1 %1758 }
0x120a   :  { %v1761_v23 = vmul.f32 %v2935_v21, %v1759_v22 }
0x120c   :  { %1763 = vrot.lane.b32.xlu1 %v1761_v23, %s2987_s4  ;;  %v2053_v23 = vld [vmem:[#allocation4 + $0x8] sm:$0x3] }
0x127a   :  { %v1781_v25 = vpop.permute.xlu0 %1780 }
0x127b   :  { %v1783_v26 = vadd.f32 %v1781_v25, %v1773_v24  ;;  %v2051_v25 = vld [vmem:[#allocation4 + $0x4] sm:$0x3] }
0x127d   :  { %2936 = vtanh.f32 %v1783_v26 }
0x127e   :  { %v1764_v28 = vpop.permute.xlu1 %1763 }
0x127f   :  { %v1766_v29 = vadd.f32 %v1764_v28, %v1756_v27  ;;  %v2054_v27 = vld [vmem:[#allocation4 + $0xa] sm:$0x3]  ;;  %v2055_v28 = vld [vmem:[#allocation4 + $0xc] sm:$0x3] }
0x1281   :  { %2938 = vtanh.f32 %v1766_v29 }
0x1287   :  { %v2937_v31 = vpop.eup %2936 }
0x1288   :  { %1786 = vrot.lane.b32.xlu0 %v2937_v31, %s2987_s4  ;;  %v2086_v31 = vcombine.low %v2053_v23, %v2054_v27 }
0x128b   :  { %v2939_v32 = vpop.eup %2938 }
0x128c   :  { %1769 = vrot.lane.b32.xlu1 %v2939_v32, %s2987_s4  ;;  %v2038_v32 = vld [vmem:[#allocation3 + $0x2] sm:$0x3] }
0x12fa   :  { %v1787_v33 = vpop.permute.xlu0 %1786 }
0x12fb   :  { %v1789_v34 = vmul.f32 %v2933_v18, %v1787_v33  ;;  %v2045_v18 = vld [vmem:[%s3460_s5] sm:$0xff] }
0x12fc   :  { %v2039_v33 = vld [vmem:[#allocation3 + $0x4] sm:$0x3] }
0x12fd   :  { %v1810_v35 = vrot.slane %v1789_v34, %v3062_v10 }
0x12fe   :  { %v1770_v36 = vpop.permute.xlu1 %1769 }
0x12ff   :  { %v1772_v38 = vmul.f32 %v2935_v21, %v1770_v36  ;;  %1811 = vrot.lane.b32.xlu0 %v1810_v35, %s2988_s26  ;;  %v2809_v21 = vpack.c.bf16 %v2046_v19, %v2045_v18  ;;  %v2056_v35 = vld [vmem:[#allocation4 + $0xe] sm:$0x3] }
0x1301   :  { %v1797_v39 = vrot.slane %v1772_v38, %v3062_v10 }
0x1303   :  { %1798 = vrot.lane.b32.xlu1 %v1797_v39, %s2988_s26 }
0x1371   :  { %v1812_v41 = vpop.permute.xlu0 %1811 }
0x1372   :  { %1815 = vst.msk [vmem:[#allocation4 + $0x2] sm:$0x3] %vm463_vm2, %v1812_v41  ;;  %2677 = vmatmul.mubr.msk.f32.vlgmr.msra.gmra.mrb[20].mxu0 %vm256_vm3, %v1812_v41  ;;  %v2087_v41 = vcombine.low %v2055_v28, %v2056_v35 }
0x1375   :  { %v1799_v42 = vpop.permute.xlu1 %1798 }
0x1376   :  { %1802 = vst.msk [vmem:[#allocation3 + $0xc] sm:$0x3] %vm463_vm2, %v1799_v42  ;;  %2666 = vmatmul.mubr.msk.f32.vlgmr.msra.gmra.mrb[12].mxu1 %vm256_vm3, %v1799_v42  ;;  %v2037_v42 = vld [vmem:[#allocation3] sm:$0x3] }
0x1377   :  { %2804 = vmatpush3.bf16.msra.mxu1 %v2801_v30 }
0x1378   :  { %2806 = vmatprep.subr.bf16.mxu1 %v2805_v4 }
0x1379   :  { %v2050_v39 = vld [vmem:[#allocation4 + $0x2] sm:$0x3] }
0x137b   :  { %2808 = vmatpush3.bf16.msra.mxu1 %v2805_v4 }
0x137c   :  { %2810 = vmatprep.subr.bf16.mxu1 %v2809_v21 }
0x1445   :  { %v1959_v45 = vpop.f32.mrb[20].mxu0 }
0x1446   :  { %v1963_v46 = vadd.f32 %v1959_v45, %v1890_v44  ;;  %v2678_v47 = vpop.f32.mrb[21].mxu0  ;;  %v2190_v45 = vcombine.low %v2037_v42, %v2038_v32 }
0x1448   :  { %2940 = vtanh.f32 %v1963_v46  ;;  %v2405_v54 = vmul.f32 -1.442695, %v1963_v46  ;;  %v2094_v46 = vrot.slane %v2086_v31, %v3062_v10 }
0x1449   :  { %v1885_v49 = vpop.f32.mrb[12].mxu1 }
0x144a   :  { %v1889_v50 = vadd.f32 %v1885_v49, %v1816_v48  ;;  %v2667_v51 = vpop.f32.mrb[13].mxu1 }
0x144b   :  { %v2048_v51 = vld [vmem:[%s3460_s5 + $0x18] sm:$0xff] }
0x144c   :  { %2942 = vtanh.f32 %v1889_v50  ;;  %v2404_v55 = vmul.f32 -1.442695, %v1889_v50  ;;  %v2047_v50 = vld [vmem:[%s3460_s5 + $0x10] sm:$0xff] }
0x144d   :  { %2944 = vpow2.f32 %v2405_v54 }
0x144e   :  { %2946 = vpow2.f32 %v2404_v55  ;;  %v2198_v55 = vrot.slane %v2190_v45, %v3062_v10 }
0x1452   :  { %v2941_v52 = vpop.eup %2940 }
0x1453   :  { %1997 = vrot.lane.b32.xlu0 %v2941_v52, %s2987_s4  ;;  %v2101_v52 = vrot.slane %v2087_v41, %v3062_v10 }
0x1456   :  { %v2943_v53 = vpop.eup %2942 }
0x1457   :  { %1980 = vrot.lane.b32.xlu1 %v2943_v53, %s2987_s4  ;;  %v2945_v56 = vpop.eup %2944 }
0x1458   :  { %v1974_v57 = vadd.f32 1.0, %v2945_v56  ;;  %v2947_v58 = vpop.eup %2946  ;;  %v2042_v56 = vld [vmem:[#allocation3 + $0xa] sm:$0x3] }
0x1459   :  { %v1967_v59 = vadd.f32 1.0, %v2947_v58  ;;  %v2102_v58 = vcombine.low %v2094_v46, %v2101_v52 }
0x145a   :  { %2948 = vrcp.f32 %v1974_v57  ;;  %v2043_v57 = vld [vmem:[#allocation3 + $0xc] sm:$0x3] }
0x145b   :  { %2950 = vrcp.f32 %v1967_v59  ;;  %v2813_v59 = vpack.c.bf16 %v2048_v51, %v2047_v50 }
0x1464   :  { %v2949_v60 = vpop.eup %2948 }
0x1465   :  { %v2951_v63 = vpop.eup %2950  ;;  %v1995_v3 = vmul.f32 %v2949_v60, %v1783_v26  ;;  %v2040_v26 = vld [vmem:[#allocation3 + $0x6] sm:$0x3] }
0x1466   :  { %v1978_v40 = vmul.f32 %v2951_v63, %v1766_v29  ;;  %v2052_v29 = vld [vmem:[#allocation4 + $0x6] sm:$0x3]  ;;  %v2191_v36 = vcombine.low %v2039_v33, %v2040_v26 }
0x1467   :  { %v2070_v34 = vcombine.low %v2051_v25, %v2052_v29 }
0x1468   :  { %v2205_v49 = vrot.slane %v2191_v36, %v3062_v10 }
0x1469   :  { %v2084_v48 = vrot.slane %v2070_v34, %v3062_v10 }
0x14c5   :  { %v1998_v61 = vpop.permute.xlu0 %1997 }
0x14c6   :  { %v2000_v62 = vmul.f32 %v2949_v60, %v1998_v61  ;;  %v2206_v61 = vcombine.low %v2198_v55, %v2205_v49 }
0x14c8   :  { %2002 = vrot.lane.b32.xlu0 %v2000_v62, %s2987_s4  ;;  %v2041_v62 = vld [vmem:[#allocation3 + $0x8] sm:$0x3] }
0x14c9   :  { %v1981_v0 = vpop.permute.xlu1 %1980 }
0x14ca   :  { %v1983_v2 = vmul.f32 %v2951_v63, %v1981_v0 }
0x14cc   :  { %1985 = vrot.lane.b32.xlu1 %v1983_v2, %s2987_s4 }
0x153a   :  { %v2003_v5 = vpop.permute.xlu0 %2002 }
0x153b   :  { %v2005_v6 = vadd.f32 %v2003_v5, %v1995_v3  ;;  %v2410_v5 = vld [vmem:[%s3462_s7] ss:$0 sm:$0xff] }
0x153d   :  { %2952 = vtanh.f32 %v2005_v6 }
0x153e   :  { %v1986_v7 = vpop.permute.xlu1 %1985 }
0x153f   :  { %v1988_v8 = vadd.f32 %v1986_v7, %v1978_v40 }
0x1541   :  { %2954 = vtanh.f32 %v1988_v8 }
0x1547   :  { %v2953_v9 = vpop.eup %2952 }
0x1548   :  { %2008 = vrot.lane.b32.xlu0 %v2953_v9, %s2987_s4 }
0x154b   :  { %v2955_v11 = vpop.eup %2954 }
0x154c   :  { %1991 = vrot.lane.b32.xlu1 %v2955_v11, %s2987_s4 }
0x15ba   :  { %v2009_v1 = vpop.permute.xlu0 %2008 }
0x15bb   :  { %v2011_v37 = vmul.f32 %v2949_v60, %v2009_v1 }
0x15bd   :  { %v2032_v15 = vrot.slane %v2011_v37, %v3062_v10 }
0x15be   :  { %v1992_v16 = vpop.permute.xlu1 %1991 }
0x15bf   :  { %v1994_v17 = vmul.f32 %v2951_v63, %v1992_v16  ;;  %2033 = vrot.lane.b32.xlu0 %v2032_v15, %s2988_s26  ;;  %v2207_v63 = vcombine.low %v2041_v62, %v2042_v56 }
0x15c1   :  { %v2019_v20 = vrot.slane %v1994_v17, %v3062_v10  ;;  %v2215_v2 = vrot.slane %v2207_v63, %v3062_v10 }
0x15c3   :  { %2020 = vrot.lane.b32.xlu1 %v2019_v20, %s2988_s26 }
0x1631   :  { %v2034_v22 = vpop.permute.xlu0 %2033 }
0x1632   :  { %2036 = vst.msk [vmem:[#allocation4] sm:$0x3] %vm463_vm2, %v2034_v22 }
0x1635   :  { %v2021_v24 = vpop.permute.xlu1 %2020 }
0x1636   :  { %2024 = vst.msk [vmem:[#allocation3 + $0xe] sm:$0x3] %vm463_vm2, %v2021_v24 }
0x1639   :  { %v2049_v38 = vld [vmem:[#allocation4] sm:$0x3] }
0x163a   :  { %v2069_v44 = vcombine.low %v2049_v38, %v2050_v39 }
0x163c   :  { %v2077_v47 = vrot.slane %v2069_v44, %v3062_v10 }
0x163d   :  { %v2044_v53 = vld [vmem:[#allocation3 + $0xe] sm:$0x3] }
0x163e   :  { %v2085_v54 = vcombine.low %v2077_v47, %v2084_v48  ;;  %v2208_v60 = vcombine.low %v2043_v57, %v2044_v53 }
0x1640   :  { %2687 = vmatprep.mubr.msk.f32.mxu1 %vm256_vm3, %v2085_v54  ;;  %v2222_v0 = vrot.slane %v2208_v60, %v3062_v10 }
0x1641   :  { %2688 = vmatmul.mubr.msk.f32.vlgmr.msra.gmra.mrb[14].mxu1 %vm256_vm3, %v2102_v58 }
0x1642   :  { %2812 = vmatpush3.bf16.msra.mxu1 %v2809_v21  ;;  %2698 = vmatprep.mubr.msk.f32.mxu1 %vm256_vm3, %v2206_v61  ;;  %v2223_v3 = vcombine.low %v2215_v2, %v2222_v0 }
0x1643   :  { %2814 = vmatprep.subr.bf16.mxu1 %v2813_v59 }
0x1646   :  { %2816 = vmatpush3.bf16.msra.mxu1 %v2813_v59 }
0x1649   :  { %2699 = vmatmul.mubr.msk.f32.vlgmr.msra.gmra.mrb[14].mxu1 %vm256_vm3, %v2223_v3 }
0x171c   :  { %v2700_v6 = vpop.f32.mrb[14].mxu1 }
0x171d   :  { %v2311_v40 = vadd.f32 %v2700_v6, %v2410_v5  ;;  %v2294_v7 = vpop.f32.mrb[15].mxu1 }
0x171e   :  { %v2310_v8 = vadd.f32 %v2410_v5, %v2294_v7 }
0x171f   :  { %v2331_v9 = vcombine.high %v2311_v40, %v2311_v40  ;;  %v2338_v11 = vrot.slane %v2311_v40, %v3062_v10 }
0x1720   :  { %v2314_v12 = vcombine.high %v2310_v8, %v2310_v8  ;;  %v2321_v13 = vrot.slane %v2310_v8, %v3062_v10 }
0x1721   :  { %v2345_v14 = vrot.slane %v2331_v9, %v3062_v10  ;;  %v2346_v30 = vcombine.high %v2338_v11, %v2338_v11  ;;  %2361 = vst.msk [vmem:[%s3463_s8 + $0x8] sm:$0x3] %vm2356_vm4, %v2338_v11 }
0x1722   :  { %v2328_v43 = vrot.slane %v2314_v12, %v3062_v10  ;;  %v2329_v4 = vcombine.high %v2321_v13, %v2321_v13  ;;  %2357 = vst.msk [vmem:[%s3463_s8] sm:$0x3] %vm2356_vm4, %v2321_v13 }
0x1723   :  { %v2347_v1 = vcombine.high %v2345_v14, %v2345_v14  ;;  %2362 = vst.msk [vmem:[%s3463_s8 + $0xa] sm:$0x3] %vm2356_vm4, %v2346_v30  ;;  %2363 = vst.msk [vmem:[%s3463_s8 + $0xc] sm:$0x3] %vm2356_vm4, %v2345_v14 }
0x1724   :  { %v2330_v37 = vcombine.high %v2328_v43, %v2328_v43  ;;  %2358 = vst.msk [vmem:[%s3463_s8 + $0x2] sm:$0x3] %vm2356_vm4, %v2329_v4  ;;  %2359 = vst.msk [vmem:[%s3463_s8 + $0x4] sm:$0x3] %vm2356_vm4, %v2328_v43 }
0x1725   :  { %2364 = vst.msk [vmem:[%s3463_s8 + $0xe] sm:$0x3] %vm2356_vm4, %v2347_v1 }
0x1726   :  { %2360 = vst.msk [vmem:[%s3463_s8 + $0x6] sm:$0x3] %vm2356_vm4, %v2330_v37 }
0x1727   :  { %2369 = vsyncpa [#allocation6], 1 }

</bundles_post_ra>
